<compile_context>
chip_gen: v6e
topology: v6e:2x2x1
jax: 0.10.0
libtpu: 0.0.40
codegen_flags: <defaults>
</compile_context>

<pallas_src>
import functools

import jax
import jax.numpy as jnp
from jax import lax
from jax.experimental import pallas as pl
from jax.experimental.pallas import tpu as pltpu


def _round_up(v, m):
    return (v + m - 1) // m * m


def _reorder_pad_gates(w, H, H_pad):
    """w: (4H, C) rows grouped (i, f, g, o) (PyTorch order) ->
    (4*H_pad, C) rows grouped (i, f, o, g), each gate block zero-padded."""
    i, f, g, o = w[0:H], w[H:2 * H], w[2 * H:3 * H], w[3 * H:4 * H]
    pad = ((0, H_pad - H), (0, 0))
    return jnp.concatenate([jnp.pad(blk, pad) for blk in (i, f, o, g)], axis=0)


def _lstm_chunk_kernel(x_ref, wih_ref, whh_ref, b_ref, len_ref,
                       out_ref, last_ref, hn_ref, cn_ref,
                       h_scr, c_scr, gx_scr,
                       *, hidden_pad, time_chunk, batch_pad, unroll):
    """One grid step = one chunk of `time_chunk` timesteps.

    x_ref:   (TL*B, D)  time-major rows of this chunk (row = t_local*B + b), bf16
    wih_ref: (D, 4H)    input->gate weights, bf16, gate order (i, f, o, g)
    whh_ref: (H, 4H)    hidden->gate weights, bf16, gate order (i, f, o, g)
    b_ref:   (1, 4H)    bias_ih + bias_hh, f32 (reordered/padded)
    len_ref: (B, 1)     int32 original sequence lengths (0 for padded rows)
    out_ref: (TL, B, H) this chunk's outputs (zeros past each seq's length)
    last_ref:(B, H)     output at last unpadded step   (written on last chunk)
    hn_ref:  (1, B, H)  final hidden state             (written on last chunk)
    cn_ref:  (1, B, H)  final cell state               (written on last chunk)
    h_scr/c_scr: (B, H) f32 recurrent state carried across grid steps
    gx_scr: (TL*B, 4H)  f32 hoisted input projection (+bias) for this chunk
    """
    H = hidden_pad
    TL = time_chunk
    B = batch_pad
    chunk = pl.program_id(0)

    @pl.when(chunk == 0)
    def _init():
        h_scr[...] = jnp.zeros_like(h_scr)
        c_scr[...] = jnp.zeros_like(c_scr)

    # ---- Hoisted input projection: one bf16 MXU matmul per chunk, bias folded.
    gx_scr[...] = jnp.dot(x_ref[...], wih_ref[...],
                          preferred_element_type=jnp.float32) + b_ref[...]

    # Loop-invariant loads, hoisted off the per-step path.
    whh = whh_ref[...]          # (H, 4H) bf16
    lens = len_ref[...]         # (B, 1)  int32
    t_base = chunk * TL

    def step(t, carry):
        h, c = carry
        # Only the recurrent matmul (bf16 MXU) is left on the serial path.
        row = pl.multiple_of(t * B, 8)
        gates = gx_scr[pl.ds(row, B)] + jnp.dot(
            h.astype(jnp.bfloat16), whh,
            preferred_element_type=jnp.float32)                 # (B, 4H)

        # Gate order (i, f, o, g): one sigmoid over the first 3H lanes, one
        # tanh over the last H lanes (instead of both over all 4H).
        sig = jax.nn.sigmoid(gates[:, :3 * H])
        g_g = jnp.tanh(gates[:, 3 * H:])
        i_g = sig[:, 0 * H:1 * H]
        f_g = sig[:, 1 * H:2 * H]
        o_g = sig[:, 2 * H:3 * H]

        c_new = f_g * c + i_g * g_g
        h_new = o_g * jnp.tanh(c_new)

        # Packed-sequence semantics: freeze state and zero the output past
        # each sequence's length (also masks padded batch rows and any
        # padded/garbage tail of the final partial chunk).
        valid = (t_base + t) < lens                             # (B, 1) bool
        h = jnp.where(valid, h_new, h)
        c = jnp.where(valid, c_new, c)
        out_ref[t] = jnp.where(valid, h_new, 0.0).astype(out_ref.dtype)
        return h, c

    h_f, c_f = lax.fori_loop(0, TL, step, (h_scr[...], c_scr[...]),
                             unroll=unroll)
    h_scr[...] = h_f
    c_scr[...] = c_f

    # Dropout p=0.0 -> identity.  Last unpadded output == final hidden state.
    @pl.when(chunk == pl.num_programs(0) - 1)
    def _finalize():
        last_ref[...] = h_scr[...].astype(last_ref.dtype)
        hn_ref[...] = h_scr[...][None, :, :].astype(hn_ref.dtype)
        cn_ref[...] = c_scr[...][None, :, :].astype(cn_ref.dtype)


def lstm_rnn_forward(x, lengths, w_ih, w_hh, b_ih, b_hh, *, time_chunk=32,
                     vmem_budget_bytes=44 * 1024 * 1024):
    """x: [B, L, D] float, lengths: [B] int.

    w_ih: [4H, D], w_hh: [4H, H], b_ih/b_hh: [4H] (PyTorch layout, gates i,f,g,o)
    """
    B, L, D = x.shape
    H = w_hh.shape[1]

    B_pad = _round_up(B, 8)      # sublane alignment for the batch dim
    H_pad = _round_up(H, 128)    # lane alignment for gate slices / stores

    # ---- Time-chunk selection: multiple of 8 (or the full sequence) and
    # shrunk until the per-chunk VMEM footprint fits the budget (v7x: 64 MiB).
    def footprint(tl):
        x_blk = 2 * tl * B_pad * D * 2                  # bf16 x, double-buffered
        out_blk = 2 * tl * B_pad * H_pad * 4            # f32 out, double-buffered
        gx = tl * B_pad * 4 * H_pad * 4                 # f32 projection scratch
        w = 2 * (D + H_pad) * 4 * H_pad * 2             # bf16 weights, dbl-buffered
        misc = 10 * B_pad * H_pad * 4 + 4 * H_pad * 8   # carries, residents, bias
        return x_blk + out_blk + gx + w + misc

    TL = min(int(time_chunk), L)
    if TL < L:
        TL = max(8, (TL // 8) * 8)
        if TL >= L:
            TL = L
        else:
            while TL > 8 and footprint(TL) > vmem_budget_bytes:
                TL = max(8, ((TL // 2) // 8) * 8)
    n_chunks = pl.cdiv(L, TL)
    unroll = max(1, min(8, TL))

    # ---- Glue: bf16 time-major rows (row = t*B_pad + b), reordered/padded
    # transposed weights, fused bias, zero-padded lengths.
    x_p = jnp.pad(x.astype(jnp.bfloat16), ((0, B_pad - B), (0, 0), (0, 0)))
    x_flat = jnp.transpose(x_p, (1, 0, 2)).reshape(L * B_pad, D)

    wih_t = jnp.transpose(
        _reorder_pad_gates(w_ih, H, H_pad)).astype(jnp.bfloat16)     # (D, 4H_pad)
    whh_r = jnp.pad(_reorder_pad_gates(w_hh, H, H_pad),
                    ((0, 0), (0, H_pad - H)))                        # (4H_pad, H_pad)
    whh_t = jnp.transpose(whh_r).astype(jnp.bfloat16)                # (H_pad, 4H_pad)
    bias = jnp.transpose(
        _reorder_pad_gates((b_ih + b_hh)[:, None], H, H_pad)
    ).astype(jnp.float32)                                            # (1, 4H_pad)
    lens = jnp.pad(lengths.astype(jnp.int32),
                   (0, B_pad - B)).reshape(B_pad, 1)                 # (B_pad, 1)

    kernel = functools.partial(_lstm_chunk_kernel, hidden_pad=H_pad,
                               time_chunk=TL, batch_pad=B_pad, unroll=unroll)

    out_shapes = (
        jax.ShapeDtypeStruct((L, B_pad, H_pad), jnp.float32),   # out (time-major)
        jax.ShapeDtypeStruct((B_pad, H_pad), jnp.float32),      # last timestep
        jax.ShapeDtypeStruct((1, B_pad, H_pad), jnp.float32),   # h_n
        jax.ShapeDtypeStruct((1, B_pad, H_pad), jnp.float32),   # c_n
    )

    grid_spec = pltpu.PrefetchScalarGridSpec(
        num_scalar_prefetch=0,
        grid=(n_chunks,),
        in_specs=[
            pl.BlockSpec((TL * B_pad, D), lambda i: (i, 0)),      # x rows (chunk)
            pl.BlockSpec((D, 4 * H_pad), lambda i: (0, 0)),       # W_ih (bf16)
            pl.BlockSpec((H_pad, 4 * H_pad), lambda i: (0, 0)),   # W_hh (bf16)
            pl.BlockSpec((1, 4 * H_pad), lambda i: (0, 0)),       # bias
            pl.BlockSpec((B_pad, 1), lambda i: (0, 0)),           # lengths
        ],
        out_specs=[
            pl.BlockSpec((TL, B_pad, H_pad), lambda i: (i, 0, 0)),    # out chunk
            pl.BlockSpec((B_pad, H_pad), lambda i: (0, 0)),           # last (resident)
            pl.BlockSpec((1, B_pad, H_pad), lambda i: (0, 0, 0)),     # h_n (resident)
            pl.BlockSpec((1, B_pad, H_pad), lambda i: (0, 0, 0)),     # c_n (resident)
        ],
        scratch_shapes=[
            pltpu.VMEM((B_pad, H_pad), jnp.float32),                # h carry
            pltpu.VMEM((B_pad, H_pad), jnp.float32),                # c carry
            pltpu.VMEM((TL * B_pad, 4 * H_pad), jnp.float32),       # x-projection
        ],
    )

    vmem_limit = int(min(96 * 1024 * 1024,
                         max(32 * 1024 * 1024, footprint(TL) * 5 // 4)))

    out_tm, last_p, hn_p, cn_p = pl.pallas_call(
        kernel,
        out_shape=out_shapes,
        grid_spec=grid_spec,
        compiler_params=pltpu.CompilerParams(
            dimension_semantics=("arbitrary",),
            vmem_limit_bytes=vmem_limit),
    )(x_flat, wih_t, whh_t, bias, lens)

    # Back to batch-first [B, L, H]; padded batch rows / hidden lanes sliced off
    # (no-ops when B, H are already aligned).
    out = jnp.transpose(out_tm, (1, 0, 2))[:B, :, :H]
    last = last_p[:B, :H]
    h_n = hn_p[:, :B, :H]
    c_n = cn_p[:, :B, :H]
    return out, last, (h_n, c_n)


def _reference_lstm(x, lengths, w_ih, w_hh, b_ih, b_hh):
    """Pure-JAX packed-sequence LSTM mirroring the kernel math (for checking)."""
    B, L, D = x.shape
    H = w_hh.shape[1]
    wih_t = jnp.transpose(w_ih).astype(jnp.bfloat16)
    whh_t = jnp.transpose(w_hh).astype(jnp.bfloat16)
    bias = (b_ih + b_hh).astype(jnp.float32)
    gx = jnp.dot(x.astype(jnp.bfloat16).reshape(B * L, D), wih_t,
                 preferred_element_type=jnp.float32).reshape(B, L, 4 * H) + bias
    lens = lengths.astype(jnp.int32)

    def step(carry, t):
        h, c = carry
        g = gx[:, t, :] + jnp.dot(h.astype(jnp.bfloat16), whh_t,
                                  preferred_element_type=jnp.float32)
        i = jax.nn.sigmoid(g[:, 0 * H:1 * H])
        f = jax.nn.sigmoid(g[:, 1 * H:2 * H])
        gg = jnp.tanh(g[:, 2 * H:3 * H])
        o = jax.nn.sigmoid(g[:, 3 * H:4 * H])
        c_new = f * c + i * gg
        h_new = o * jnp.tanh(c_new)
        valid = (t < lens)[:, None]
        h = jnp.where(valid, h_new, h)
        c = jnp.where(valid, c_new, c)
        return (h, c), jnp.where(valid, h_new, 0.0)

    init = (jnp.zeros((B, H), jnp.float32), jnp.zeros((B, H), jnp.float32))
    (h, c), outs = lax.scan(step, init, jnp.arange(L))
    return jnp.transpose(outs, (1, 0, 2)), h, (h[None], c[None])


if __name__ == "__main__":
    B, L, D, H = 2, 20, 16, 32

    key = jax.random.PRNGKey(0)
    kx, k1, k2, k3, k4 = jax.random.split(key, 5)

    x = jax.random.normal(kx, (B, L, D), dtype=jnp.float32)
    # max(lengths) == L so the "unpack to max length" step is the identity.
    lengths = jnp.array([20, 13], dtype=jnp.int32)

    # Deterministic LSTM params (PyTorch-style uniform(-1/sqrt(H), 1/sqrt(H))).
    bound = 1.0 / jnp.sqrt(jnp.float32(H))
    w_ih = jax.random.uniform(k1, (4 * H, D), jnp.float32, -bound, bound)
    w_hh = jax.random.uniform(k2, (4 * H, H), jnp.float32, -bound, bound)
    b_ih = jax.random.uniform(k3, (4 * H,), jnp.float32, -bound, bound)
    b_hh = jax.random.uniform(k4, (4 * H,), jnp.float32, -bound, bound)

    # time_chunk=8 -> 3 grid steps (8, 8, partial 4): exercises the VMEM-carried
    # h/c state, batch/hidden padding, and the masked partial final chunk.
    fwd = jax.jit(functools.partial(lstm_rnn_forward, time_chunk=8))
    out, last, (h_n, c_n) = fwd(x, lengths, w_ih, w_hh, b_ih, b_hh)
    jax.block_until_ready((out, last, h_n, c_n))

    assert out.shape == (B, L, H)
    assert last.shape == (B, H)
    assert h_n.shape == (1, B, H) and c_n.shape == (1, B, H)

    # Correctness check against a pure-JAX reference (packed-LSTM semantics).
    r_out, r_last, (r_hn, r_cn) = jax.jit(_reference_lstm)(
        x, lengths, w_ih, w_hh, b_ih, b_hh)
    for got, want in ((out, r_out), (last, r_last), (h_n, r_hn), (c_n, r_cn)):
        err = float(jnp.max(jnp.abs(got - want)))
        assert err < 2e-2, f"kernel/reference mismatch, max abs err {err}"

    print("KERNEL_OK")
</pallas_src>

<mosaic_0001>
module attributes {stable_mosaic.version = 11 : i64} {
  func.func @_lstm_chunk_kernel(%arg0: i32, %arg1: memref<64x16xbf16, #tpu.memory_space<vmem>>, %arg2: memref<16x512xbf16, #tpu.memory_space<vmem>>, %arg3: memref<128x512xbf16, #tpu.memory_space<vmem>>, %arg4: memref<1x512xf32, #tpu.memory_space<vmem>>, %arg5: memref<8x1xi32, #tpu.memory_space<vmem>>, %arg6: memref<8x8x128xf32, #tpu.memory_space<vmem>>, %arg7: memref<8x128xf32, #tpu.memory_space<vmem>>, %arg8: memref<1x8x128xf32, #tpu.memory_space<vmem>>, %arg9: memref<1x8x128xf32, #tpu.memory_space<vmem>>, %arg10: memref<8x128xf32, #tpu.memory_space<vmem>>, %arg11: memref<8x128xf32, #tpu.memory_space<vmem>>, %arg12: memref<64x512xf32, #tpu.memory_space<vmem>>) attributes {dimension_semantics = [#tpu.dimension_semantics<arbitrary>], iteration_bounds = array<i64: 3>, scalar_prefetch = 0 : i64, scratch_operands = 3 : i64, tpu.core_type = #tpu.core_type<tc>, window_params = [{transform_indices = @transform_0, window_bounds = array<i64: 64, 16>}, {pipeline_mode = #tpu.pipeline_mode<synchronous>, transform_indices = @transform_1, window_bounds = array<i64: 16, 512>}, {pipeline_mode = #tpu.pipeline_mode<synchronous>, transform_indices = @transform_2, window_bounds = array<i64: 128, 512>}, {pipeline_mode = #tpu.pipeline_mode<synchronous>, transform_indices = @transform_3, window_bounds = array<i64: 1, 512>}, {pipeline_mode = #tpu.pipeline_mode<synchronous>, transform_indices = @transform_4, window_bounds = array<i64: 8, 1>}, {transform_indices = @transform_5, window_bounds = array<i64: 8, 8, 128>}, {pipeline_mode = #tpu.pipeline_mode<synchronous>, transform_indices = @transform_6, window_bounds = array<i64: 8, 128>}, {pipeline_mode = #tpu.pipeline_mode<synchronous>, transform_indices = @transform_7, window_bounds = array<i64: 1, 8, 128>}, {pipeline_mode = #tpu.pipeline_mode<synchronous>, transform_indices = @transform_8, window_bounds = array<i64: 1, 8, 128>}]} {
    %c0_i32 = arith.constant 0 : i32
    %0 = arith.cmpi eq, %arg0, %c0_i32 : i32
    %1 = arith.extui %0 : i1 to i32
    %c0_i32_0 = arith.constant 0 : i32
    %2 = arith.cmpi ne, %1, %c0_i32_0 : i32
    scf.if %2 {
      %cst_80 = arith.constant 0.000000e+00 : f32
      %340 = vector.broadcast %cst_80 : f32 to vector<8x128xf32>
      %c0_81 = arith.constant 0 : index
      %c0_82 = arith.constant 0 : index
      %341 = vector.load %arg10[%c0_81, %c0_82] : memref<8x128xf32, #tpu.memory_space<vmem>>, vector<8x128xf32>
      tpu.vector_store %arg10[%c0_81, %c0_82], %340 {strides = array<i32>} : memref<8x128xf32, #tpu.memory_space<vmem>>, vector<8x128xf32>,
      %cst_83 = arith.constant 0.000000e+00 : f32
      %342 = vector.broadcast %cst_83 : f32 to vector<8x128xf32>
      %c0_84 = arith.constant 0 : index
      %c0_85 = arith.constant 0 : index
      %343 = vector.load %arg11[%c0_84, %c0_85] : memref<8x128xf32, #tpu.memory_space<vmem>>, vector<8x128xf32>
      tpu.vector_store %arg11[%c0_84, %c0_85], %342 {strides = array<i32>} : memref<8x128xf32, #tpu.memory_space<vmem>>, vector<8x128xf32>,
    } else {
    }
    %c0 = arith.constant 0 : index
    %c0_1 = arith.constant 0 : index
    %3 = vector.load %arg1[%c0, %c0_1] : memref<64x16xbf16, #tpu.memory_space<vmem>>, vector<64x16xbf16>
    %c0_2 = arith.constant 0 : index
    %c0_3 = arith.constant 0 : index
    %4 = vector.load %arg2[%c0_2, %c0_3] : memref<16x512xbf16, #tpu.memory_space<vmem>>, vector<16x512xbf16>
    %cst = arith.constant dense<0.000000e+00> : vector<64x512xf32>
    %5 = tpu.matmul %3, %4, %cst {dimension_numbers = #tpu.dot_dimension_numbers<[1], [0], [0], [1], [0, 0, 1, 1], [], []>} : vector<64x16xbf16>, vector<16x512xbf16>, vector<64x512xf32> -> vector<64x512xf32>
    %c0_4 = arith.constant 0 : index
    %c0_5 = arith.constant 0 : index
    %6 = vector.load %arg4[%c0_4, %c0_5] : memref<1x512xf32, #tpu.memory_space<vmem>>, vector<1x512xf32>
    %7 = vector.broadcast %6 : vector<1x512xf32> to vector<64x512xf32>
    %8 = arith.addf %5, %7 : vector<64x512xf32>
    %c0_6 = arith.constant 0 : index
    %c0_7 = arith.constant 0 : index
    %9 = vector.load %arg12[%c0_6, %c0_7] : memref<64x512xf32, #tpu.memory_space<vmem>>, vector<64x512xf32>
    tpu.vector_store %arg12[%c0_6, %c0_7], %8 {strides = array<i32>} : memref<64x512xf32, #tpu.memory_space<vmem>>, vector<64x512xf32>,
    %c0_8 = arith.constant 0 : index
    %c0_9 = arith.constant 0 : index
    %10 = vector.load %arg3[%c0_8, %c0_9] : memref<128x512xbf16, #tpu.memory_space<vmem>>, vector<128x512xbf16>
    %c0_10 = arith.constant 0 : index
    %c0_11 = arith.constant 0 : index
    %11 = vector.load %arg5[%c0_10, %c0_11] : memref<8x1xi32, #tpu.memory_space<vmem>>, vector<8x1xi32>
    %c8_i32 = arith.constant 8 : i32
    %12 = arith.muli %arg0, %c8_i32 : i32
    %c0_12 = arith.constant 0 : index
    %c0_13 = arith.constant 0 : index
    %13 = vector.load %arg10[%c0_12, %c0_13] : memref<8x128xf32, #tpu.memory_space<vmem>>, vector<8x128xf32>
    %c0_14 = arith.constant 0 : index
    %c0_15 = arith.constant 0 : index
    %14 = vector.load %arg11[%c0_14, %c0_15] : memref<8x128xf32, #tpu.memory_space<vmem>>, vector<8x128xf32>
    %c0_i32_16 = arith.constant 0 : i32
    %c8_i32_17 = arith.constant 8 : i32
    %15 = arith.muli %c0_i32_16, %c8_i32_17 : i32
    %16 = tpu.assume_multiple %15, 8 : i32
    %17 = arith.index_cast %16 : i32 to index
    %c0_18 = arith.constant 0 : index
    %18 = vector.load %arg12[%17, %c0_18] : memref<64x512xf32, #tpu.memory_space<vmem>>, vector<8x512xf32>
    %19 = arith.truncf %13 : vector<8x128xf32> to vector<8x128xbf16>
    %cst_19 = arith.constant dense<0.000000e+00> : vector<8x512xf32>
    %20 = tpu.matmul %19, %10, %cst_19 {dimension_numbers = #tpu.dot_dimension_numbers<[1], [0], [0], [1], [0, 0, 1, 1], [], []>} : vector<8x128xbf16>, vector<128x512xbf16>, vector<8x512xf32> -> vector<8x512xf32>
    %21 = arith.addf %18, %20 : vector<8x512xf32>
    %22 = vector.extract_strided_slice %21 {offsets = [0, 0], sizes = [8, 384], strides = [1, 1]} : vector<8x512xf32> to vector<8x384xf32>
    %23 = arith.negf %22 : vector<8x384xf32>
    %24 = math.exp %23 : vector<8x384xf32>
    %cst_20 = arith.constant 1.000000e+00 : f32
    %25 = vector.broadcast %cst_20 : f32 to vector<8x384xf32>
    %26 = arith.addf %25, %24 : vector<8x384xf32>
    %27 = arith.divf %25, %26 : vector<8x384xf32>
    %28 = vector.extract_strided_slice %21 {offsets = [0, 384], sizes = [8, 128], strides = [1, 1]} : vector<8x512xf32> to vector<8x128xf32>
    %29 = math.tanh %28 : vector<8x128xf32>
    %30 = vector.extract_strided_slice %27 {offsets = [0, 0], sizes = [8, 128], strides = [1, 1]} : vector<8x384xf32> to vector<8x128xf32>
    %31 = vector.extract_strided_slice %27 {offsets = [0, 128], sizes = [8, 128], strides = [1, 1]} : vector<8x384xf32> to vector<8x128xf32>
    %32 = vector.extract_strided_slice %27 {offsets = [0, 256], sizes = [8, 128], strides = [1, 1]} : vector<8x384xf32> to vector<8x128xf32>
    %33 = arith.mulf %31, %14 : vector<8x128xf32>
    %34 = arith.mulf %30, %29 : vector<8x128xf32>
    %35 = arith.addf %33, %34 : vector<8x128xf32>
    %36 = math.tanh %35 : vector<8x128xf32>
    %37 = arith.mulf %32, %36 : vector<8x128xf32>
    %38 = arith.addi %12, %c0_i32_16 : i32
    %39 = vector.broadcast %38 : i32 to vector<8x1xi32>
    %40 = arith.cmpi slt, %39, %11 : vector<8x1xi32>
    %41 = vector.shape_cast %40 : vector<8x1xi1> to vector<8x1xi1>
    %42 = vector.broadcast %41 : vector<8x1xi1> to vector<8x128xi1>
    %43 = arith.select %42, %37, %13 : vector<8x128xi1>, vector<8x128xf32>
    %44 = vector.shape_cast %40 : vector<8x1xi1> to vector<8x1xi1>
    %45 = vector.broadcast %44 : vector<8x1xi1> to vector<8x128xi1>
    %46 = arith.select %45, %35, %14 : vector<8x128xi1>, vector<8x128xf32>
    %cst_21 = arith.constant 0.000000e+00 : f32
    %47 = vector.shape_cast %40 : vector<8x1xi1> to vector<8x1xi1>
    %48 = vector.broadcast %47 : vector<8x1xi1> to vector<8x128xi1>
    %49 = vector.broadcast %cst_21 : f32 to vector<8x128xf32>
    %50 = arith.select %48, %37, %49 : vector<8x128xi1>, vector<8x128xf32>
    %51 = arith.index_cast %c0_i32_16 : i32 to index
    %c0_22 = arith.constant 0 : index
    %c0_23 = arith.constant 0 : index
    %52 = vector.load %arg6[%51, %c0_22, %c0_23] : memref<8x8x128xf32, #tpu.memory_space<vmem>>, vector<1x8x128xf32>
    %53 = vector.shape_cast %52 : vector<1x8x128xf32> to vector<8x128xf32>
    %54 = vector.shape_cast %50 : vector<8x128xf32> to vector<1x8x128xf32>
    tpu.vector_store %arg6[%51, %c0_22, %c0_23], %54 {strides = array<i32>} : memref<8x8x128xf32, #tpu.memory_space<vmem>>, vector<1x8x128xf32>,
    %c1_i32 = arith.constant 1 : i32
    %c8_i32_24 = arith.constant 8 : i32
    %55 = arith.muli %c1_i32, %c8_i32_24 : i32
    %56 = tpu.assume_multiple %55, 8 : i32
    %57 = arith.index_cast %56 : i32 to index
    %c0_25 = arith.constant 0 : index
    %58 = vector.load %arg12[%57, %c0_25] : memref<64x512xf32, #tpu.memory_space<vmem>>, vector<8x512xf32>
    %59 = arith.truncf %43 : vector<8x128xf32> to vector<8x128xbf16>
    %cst_26 = arith.constant dense<0.000000e+00> : vector<8x512xf32>
    %60 = tpu.matmul %59, %10, %cst_26 {dimension_numbers = #tpu.dot_dimension_numbers<[1], [0], [0], [1], [0, 0, 1, 1], [], []>} : vector<8x128xbf16>, vector<128x512xbf16>, vector<8x512xf32> -> vector<8x512xf32>
    %61 = arith.addf %58, %60 : vector<8x512xf32>
    %62 = vector.extract_strided_slice %61 {offsets = [0, 0], sizes = [8, 384], strides = [1, 1]} : vector<8x512xf32> to vector<8x384xf32>
    %63 = arith.negf %62 : vector<8x384xf32>
    %64 = math.exp %63 : vector<8x384xf32>
    %cst_27 = arith.constant 1.000000e+00 : f32
    %65 = vector.broadcast %cst_27 : f32 to vector<8x384xf32>
    %66 = arith.addf %65, %64 : vector<8x384xf32>
    %67 = arith.divf %65, %66 : vector<8x384xf32>
    %68 = vector.extract_strided_slice %61 {offsets = [0, 384], sizes = [8, 128], strides = [1, 1]} : vector<8x512xf32> to vector<8x128xf32>
    %69 = math.tanh %68 : vector<8x128xf32>
    %70 = vector.extract_strided_slice %67 {offsets = [0, 0], sizes = [8, 128], strides = [1, 1]} : vector<8x384xf32> to vector<8x128xf32>
    %71 = vector.extract_strided_slice %67 {offsets = [0, 128], sizes = [8, 128], strides = [1, 1]} : vector<8x384xf32> to vector<8x128xf32>
    %72 = vector.extract_strided_slice %67 {offsets = [0, 256], sizes = [8, 128], strides = [1, 1]} : vector<8x384xf32> to vector<8x128xf32>
    %73 = arith.mulf %71, %46 : vector<8x128xf32>
    %74 = arith.mulf %70, %69 : vector<8x128xf32>
    %75 = arith.addf %73, %74 : vector<8x128xf32>
    %76 = math.tanh %75 : vector<8x128xf32>
    %77 = arith.mulf %72, %76 : vector<8x128xf32>
    %78 = arith.addi %12, %c1_i32 : i32
    %79 = vector.broadcast %78 : i32 to vector<8x1xi32>
    %80 = arith.cmpi slt, %79, %11 : vector<8x1xi32>
    %81 = vector.shape_cast %80 : vector<8x1xi1> to vector<8x1xi1>
    %82 = vector.broadcast %81 : vector<8x1xi1> to vector<8x128xi1>
    %83 = arith.select %82, %77, %43 : vector<8x128xi1>, vector<8x128xf32>
    %84 = vector.shape_cast %80 : vector<8x1xi1> to vector<8x1xi1>
    %85 = vector.broadcast %84 : vector<8x1xi1> to vector<8x128xi1>
    %86 = arith.select %85, %75, %46 : vector<8x128xi1>, vector<8x128xf32>
    %cst_28 = arith.constant 0.000000e+00 : f32
    %87 = vector.shape_cast %80 : vector<8x1xi1> to vector<8x1xi1>
    %88 = vector.broadcast %87 : vector<8x1xi1> to vector<8x128xi1>
    %89 = vector.broadcast %cst_28 : f32 to vector<8x128xf32>
    %90 = arith.select %88, %77, %89 : vector<8x128xi1>, vector<8x128xf32>
    %91 = arith.index_cast %c1_i32 : i32 to index
    %c0_29 = arith.constant 0 : index
    %c0_30 = arith.constant 0 : index
    %92 = vector.load %arg6[%91, %c0_29, %c0_30] : memref<8x8x128xf32, #tpu.memory_space<vmem>>, vector<1x8x128xf32>
    %93 = vector.shape_cast %92 : vector<1x8x128xf32> to vector<8x128xf32>
    %94 = vector.shape_cast %90 : vector<8x128xf32> to vector<1x8x128xf32>
    tpu.vector_store %arg6[%91, %c0_29, %c0_30], %94 {strides = array<i32>} : memref<8x8x128xf32, #tpu.memory_space<vmem>>, vector<1x8x128xf32>,
    %c2_i32 = arith.constant 2 : i32
    %c8_i32_31 = arith.constant 8 : i32
    %95 = arith.muli %c2_i32, %c8_i32_31 : i32
    %96 = tpu.assume_multiple %95, 8 : i32
    %97 = arith.index_cast %96 : i32 to index
    %c0_32 = arith.constant 0 : index
    %98 = vector.load %arg12[%97, %c0_32] : memref<64x512xf32, #tpu.memory_space<vmem>>, vector<8x512xf32>
    %99 = arith.truncf %83 : vector<8x128xf32> to vector<8x128xbf16>
    %cst_33 = arith.constant dense<0.000000e+00> : vector<8x512xf32>
    %100 = tpu.matmul %99, %10, %cst_33 {dimension_numbers = #tpu.dot_dimension_numbers<[1], [0], [0], [1], [0, 0, 1, 1], [], []>} : vector<8x128xbf16>, vector<128x512xbf16>, vector<8x512xf32> -> vector<8x512xf32>
    %101 = arith.addf %98, %100 : vector<8x512xf32>
    %102 = vector.extract_strided_slice %101 {offsets = [0, 0], sizes = [8, 384], strides = [1, 1]} : vector<8x512xf32> to vector<8x384xf32>
    %103 = arith.negf %102 : vector<8x384xf32>
    %104 = math.exp %103 : vector<8x384xf32>
    %cst_34 = arith.constant 1.000000e+00 : f32
    %105 = vector.broadcast %cst_34 : f32 to vector<8x384xf32>
    %106 = arith.addf %105, %104 : vector<8x384xf32>
    %107 = arith.divf %105, %106 : vector<8x384xf32>
    %108 = vector.extract_strided_slice %101 {offsets = [0, 384], sizes = [8, 128], strides = [1, 1]} : vector<8x512xf32> to vector<8x128xf32>
    %109 = math.tanh %108 : vector<8x128xf32>
    %110 = vector.extract_strided_slice %107 {offsets = [0, 0], sizes = [8, 128], strides = [1, 1]} : vector<8x384xf32> to vector<8x128xf32>
    %111 = vector.extract_strided_slice %107 {offsets = [0, 128], sizes = [8, 128], strides = [1, 1]} : vector<8x384xf32> to vector<8x128xf32>
    %112 = vector.extract_strided_slice %107 {offsets = [0, 256], sizes = [8, 128], strides = [1, 1]} : vector<8x384xf32> to vector<8x128xf32>
    %113 = arith.mulf %111, %86 : vector<8x128xf32>
    %114 = arith.mulf %110, %109 : vector<8x128xf32>
    %115 = arith.addf %113, %114 : vector<8x128xf32>
    %116 = math.tanh %115 : vector<8x128xf32>
    %117 = arith.mulf %112, %116 : vector<8x128xf32>
    %118 = arith.addi %12, %c2_i32 : i32
    %119 = vector.broadcast %118 : i32 to vector<8x1xi32>
    %120 = arith.cmpi slt, %119, %11 : vector<8x1xi32>
    %121 = vector.shape_cast %120 : vector<8x1xi1> to vector<8x1xi1>
    %122 = vector.broadcast %121 : vector<8x1xi1> to vector<8x128xi1>
    %123 = arith.select %122, %117, %83 : vector<8x128xi1>, vector<8x128xf32>
    %124 = vector.shape_cast %120 : vector<8x1xi1> to vector<8x1xi1>
    %125 = vector.broadcast %124 : vector<8x1xi1> to vector<8x128xi1>
    %126 = arith.select %125, %115, %86 : vector<8x128xi1>, vector<8x128xf32>
    %cst_35 = arith.constant 0.000000e+00 : f32
    %127 = vector.shape_cast %120 : vector<8x1xi1> to vector<8x1xi1>
    %128 = vector.broadcast %127 : vector<8x1xi1> to vector<8x128xi1>
    %129 = vector.broadcast %cst_35 : f32 to vector<8x128xf32>
    %130 = arith.select %128, %117, %129 : vector<8x128xi1>, vector<8x128xf32>
    %131 = arith.index_cast %c2_i32 : i32 to index
    %c0_36 = arith.constant 0 : index
    %c0_37 = arith.constant 0 : index
    %132 = vector.load %arg6[%131, %c0_36, %c0_37] : memref<8x8x128xf32, #tpu.memory_space<vmem>>, vector<1x8x128xf32>
    %133 = vector.shape_cast %132 : vector<1x8x128xf32> to vector<8x128xf32>
    %134 = vector.shape_cast %130 : vector<8x128xf32> to vector<1x8x128xf32>
    tpu.vector_store %arg6[%131, %c0_36, %c0_37], %134 {strides = array<i32>} : memref<8x8x128xf32, #tpu.memory_space<vmem>>, vector<1x8x128xf32>,
    %c3_i32 = arith.constant 3 : i32
    %c8_i32_38 = arith.constant 8 : i32
    %135 = arith.muli %c3_i32, %c8_i32_38 : i32
    %136 = tpu.assume_multiple %135, 8 : i32
    %137 = arith.index_cast %136 : i32 to index
    %c0_39 = arith.constant 0 : index
    %138 = vector.load %arg12[%137, %c0_39] : memref<64x512xf32, #tpu.memory_space<vmem>>, vector<8x512xf32>
    %139 = arith.truncf %123 : vector<8x128xf32> to vector<8x128xbf16>
    %cst_40 = arith.constant dense<0.000000e+00> : vector<8x512xf32>
    %140 = tpu.matmul %139, %10, %cst_40 {dimension_numbers = #tpu.dot_dimension_numbers<[1], [0], [0], [1], [0, 0, 1, 1], [], []>} : vector<8x128xbf16>, vector<128x512xbf16>, vector<8x512xf32> -> vector<8x512xf32>
    %141 = arith.addf %138, %140 : vector<8x512xf32>
    %142 = vector.extract_strided_slice %141 {offsets = [0, 0], sizes = [8, 384], strides = [1, 1]} : vector<8x512xf32> to vector<8x384xf32>
    %143 = arith.negf %142 : vector<8x384xf32>
    %144 = math.exp %143 : vector<8x384xf32>
    %cst_41 = arith.constant 1.000000e+00 : f32
    %145 = vector.broadcast %cst_41 : f32 to vector<8x384xf32>
    %146 = arith.addf %145, %144 : vector<8x384xf32>
    %147 = arith.divf %145, %146 : vector<8x384xf32>
    %148 = vector.extract_strided_slice %141 {offsets = [0, 384], sizes = [8, 128], strides = [1, 1]} : vector<8x512xf32> to vector<8x128xf32>
    %149 = math.tanh %148 : vector<8x128xf32>
    %150 = vector.extract_strided_slice %147 {offsets = [0, 0], sizes = [8, 128], strides = [1, 1]} : vector<8x384xf32> to vector<8x128xf32>
    %151 = vector.extract_strided_slice %147 {offsets = [0, 128], sizes = [8, 128], strides = [1, 1]} : vector<8x384xf32> to vector<8x128xf32>
    %152 = vector.extract_strided_slice %147 {offsets = [0, 256], sizes = [8, 128], strides = [1, 1]} : vector<8x384xf32> to vector<8x128xf32>
    %153 = arith.mulf %151, %126 : vector<8x128xf32>
    %154 = arith.mulf %150, %149 : vector<8x128xf32>
    %155 = arith.addf %153, %154 : vector<8x128xf32>
    %156 = math.tanh %155 : vector<8x128xf32>
    %157 = arith.mulf %152, %156 : vector<8x128xf32>
    %158 = arith.addi %12, %c3_i32 : i32
    %159 = vector.broadcast %158 : i32 to vector<8x1xi32>
    %160 = arith.cmpi slt, %159, %11 : vector<8x1xi32>
    %161 = vector.shape_cast %160 : vector<8x1xi1> to vector<8x1xi1>
    %162 = vector.broadcast %161 : vector<8x1xi1> to vector<8x128xi1>
    %163 = arith.select %162, %157, %123 : vector<8x128xi1>, vector<8x128xf32>
    %164 = vector.shape_cast %160 : vector<8x1xi1> to vector<8x1xi1>
    %165 = vector.broadcast %164 : vector<8x1xi1> to vector<8x128xi1>
    %166 = arith.select %165, %155, %126 : vector<8x128xi1>, vector<8x128xf32>
    %cst_42 = arith.constant 0.000000e+00 : f32
    %167 = vector.shape_cast %160 : vector<8x1xi1> to vector<8x1xi1>
    %168 = vector.broadcast %167 : vector<8x1xi1> to vector<8x128xi1>
    %169 = vector.broadcast %cst_42 : f32 to vector<8x128xf32>
    %170 = arith.select %168, %157, %169 : vector<8x128xi1>, vector<8x128xf32>
    %171 = arith.index_cast %c3_i32 : i32 to index
    %c0_43 = arith.constant 0 : index
    %c0_44 = arith.constant 0 : index
    %172 = vector.load %arg6[%171, %c0_43, %c0_44] : memref<8x8x128xf32, #tpu.memory_space<vmem>>, vector<1x8x128xf32>
    %173 = vector.shape_cast %172 : vector<1x8x128xf32> to vector<8x128xf32>
    %174 = vector.shape_cast %170 : vector<8x128xf32> to vector<1x8x128xf32>
    tpu.vector_store %arg6[%171, %c0_43, %c0_44], %174 {strides = array<i32>} : memref<8x8x128xf32, #tpu.memory_space<vmem>>, vector<1x8x128xf32>,
    %c4_i32 = arith.constant 4 : i32
    %c8_i32_45 = arith.constant 8 : i32
    %175 = arith.muli %c4_i32, %c8_i32_45 : i32
    %176 = tpu.assume_multiple %175, 8 : i32
    %177 = arith.index_cast %176 : i32 to index
    %c0_46 = arith.constant 0 : index
    %178 = vector.load %arg12[%177, %c0_46] : memref<64x512xf32, #tpu.memory_space<vmem>>, vector<8x512xf32>
    %179 = arith.truncf %163 : vector<8x128xf32> to vector<8x128xbf16>
    %cst_47 = arith.constant dense<0.000000e+00> : vector<8x512xf32>
    %180 = tpu.matmul %179, %10, %cst_47 {dimension_numbers = #tpu.dot_dimension_numbers<[1], [0], [0], [1], [0, 0, 1, 1], [], []>} : vector<8x128xbf16>, vector<128x512xbf16>, vector<8x512xf32> -> vector<8x512xf32>
    %181 = arith.addf %178, %180 : vector<8x512xf32>
    %182 = vector.extract_strided_slice %181 {offsets = [0, 0], sizes = [8, 384], strides = [1, 1]} : vector<8x512xf32> to vector<8x384xf32>
    %183 = arith.negf %182 : vector<8x384xf32>
    %184 = math.exp %183 : vector<8x384xf32>
    %cst_48 = arith.constant 1.000000e+00 : f32
    %185 = vector.broadcast %cst_48 : f32 to vector<8x384xf32>
    %186 = arith.addf %185, %184 : vector<8x384xf32>
    %187 = arith.divf %185, %186 : vector<8x384xf32>
    %188 = vector.extract_strided_slice %181 {offsets = [0, 384], sizes = [8, 128], strides = [1, 1]} : vector<8x512xf32> to vector<8x128xf32>
    %189 = math.tanh %188 : vector<8x128xf32>
    %190 = vector.extract_strided_slice %187 {offsets = [0, 0], sizes = [8, 128], strides = [1, 1]} : vector<8x384xf32> to vector<8x128xf32>
    %191 = vector.extract_strided_slice %187 {offsets = [0, 128], sizes = [8, 128], strides = [1, 1]} : vector<8x384xf32> to vector<8x128xf32>
    %192 = vector.extract_strided_slice %187 {offsets = [0, 256], sizes = [8, 128], strides = [1, 1]} : vector<8x384xf32> to vector<8x128xf32>
    %193 = arith.mulf %191, %166 : vector<8x128xf32>
    %194 = arith.mulf %190, %189 : vector<8x128xf32>
    %195 = arith.addf %193, %194 : vector<8x128xf32>
    %196 = math.tanh %195 : vector<8x128xf32>
    %197 = arith.mulf %192, %196 : vector<8x128xf32>
    %198 = arith.addi %12, %c4_i32 : i32
    %199 = vector.broadcast %198 : i32 to vector<8x1xi32>
    %200 = arith.cmpi slt, %199, %11 : vector<8x1xi32>
    %201 = vector.shape_cast %200 : vector<8x1xi1> to vector<8x1xi1>
    %202 = vector.broadcast %201 : vector<8x1xi1> to vector<8x128xi1>
    %203 = arith.select %202, %197, %163 : vector<8x128xi1>, vector<8x128xf32>
    %204 = vector.shape_cast %200 : vector<8x1xi1> to vector<8x1xi1>
    %205 = vector.broadcast %204 : vector<8x1xi1> to vector<8x128xi1>
    %206 = arith.select %205, %195, %166 : vector<8x128xi1>, vector<8x128xf32>
    %cst_49 = arith.constant 0.000000e+00 : f32
    %207 = vector.shape_cast %200 : vector<8x1xi1> to vector<8x1xi1>
    %208 = vector.broadcast %207 : vector<8x1xi1> to vector<8x128xi1>
    %209 = vector.broadcast %cst_49 : f32 to vector<8x128xf32>
    %210 = arith.select %208, %197, %209 : vector<8x128xi1>, vector<8x128xf32>
    %211 = arith.index_cast %c4_i32 : i32 to index
    %c0_50 = arith.constant 0 : index
    %c0_51 = arith.constant 0 : index
    %212 = vector.load %arg6[%211, %c0_50, %c0_51] : memref<8x8x128xf32, #tpu.memory_space<vmem>>, vector<1x8x128xf32>
    %213 = vector.shape_cast %212 : vector<1x8x128xf32> to vector<8x128xf32>
    %214 = vector.shape_cast %210 : vector<8x128xf32> to vector<1x8x128xf32>
    tpu.vector_store %arg6[%211, %c0_50, %c0_51], %214 {strides = array<i32>} : memref<8x8x128xf32, #tpu.memory_space<vmem>>, vector<1x8x128xf32>,
    %c5_i32 = arith.constant 5 : i32
    %c8_i32_52 = arith.constant 8 : i32
    %215 = arith.muli %c5_i32, %c8_i32_52 : i32
    %216 = tpu.assume_multiple %215, 8 : i32
    %217 = arith.index_cast %216 : i32 to index
    %c0_53 = arith.constant 0 : index
    %218 = vector.load %arg12[%217, %c0_53] : memref<64x512xf32, #tpu.memory_space<vmem>>, vector<8x512xf32>
    %219 = arith.truncf %203 : vector<8x128xf32> to vector<8x128xbf16>
    %cst_54 = arith.constant dense<0.000000e+00> : vector<8x512xf32>
    %220 = tpu.matmul %219, %10, %cst_54 {dimension_numbers = #tpu.dot_dimension_numbers<[1], [0], [0], [1], [0, 0, 1, 1], [], []>} : vector<8x128xbf16>, vector<128x512xbf16>, vector<8x512xf32> -> vector<8x512xf32>
    %221 = arith.addf %218, %220 : vector<8x512xf32>
    %222 = vector.extract_strided_slice %221 {offsets = [0, 0], sizes = [8, 384], strides = [1, 1]} : vector<8x512xf32> to vector<8x384xf32>
    %223 = arith.negf %222 : vector<8x384xf32>
    %224 = math.exp %223 : vector<8x384xf32>
    %cst_55 = arith.constant 1.000000e+00 : f32
    %225 = vector.broadcast %cst_55 : f32 to vector<8x384xf32>
    %226 = arith.addf %225, %224 : vector<8x384xf32>
    %227 = arith.divf %225, %226 : vector<8x384xf32>
    %228 = vector.extract_strided_slice %221 {offsets = [0, 384], sizes = [8, 128], strides = [1, 1]} : vector<8x512xf32> to vector<8x128xf32>
    %229 = math.tanh %228 : vector<8x128xf32>
    %230 = vector.extract_strided_slice %227 {offsets = [0, 0], sizes = [8, 128], strides = [1, 1]} : vector<8x384xf32> to vector<8x128xf32>
    %231 = vector.extract_strided_slice %227 {offsets = [0, 128], sizes = [8, 128], strides = [1, 1]} : vector<8x384xf32> to vector<8x128xf32>
    %232 = vector.extract_strided_slice %227 {offsets = [0, 256], sizes = [8, 128], strides = [1, 1]} : vector<8x384xf32> to vector<8x128xf32>
    %233 = arith.mulf %231, %206 : vector<8x128xf32>
    %234 = arith.mulf %230, %229 : vector<8x128xf32>
    %235 = arith.addf %233, %234 : vector<8x128xf32>
    %236 = math.tanh %235 : vector<8x128xf32>
    %237 = arith.mulf %232, %236 : vector<8x128xf32>
    %238 = arith.addi %12, %c5_i32 : i32
    %239 = vector.broadcast %238 : i32 to vector<8x1xi32>
    %240 = arith.cmpi slt, %239, %11 : vector<8x1xi32>
    %241 = vector.shape_cast %240 : vector<8x1xi1> to vector<8x1xi1>
    %242 = vector.broadcast %241 : vector<8x1xi1> to vector<8x128xi1>
    %243 = arith.select %242, %237, %203 : vector<8x128xi1>, vector<8x128xf32>
    %244 = vector.shape_cast %240 : vector<8x1xi1> to vector<8x1xi1>
    %245 = vector.broadcast %244 : vector<8x1xi1> to vector<8x128xi1>
    %246 = arith.select %245, %235, %206 : vector<8x128xi1>, vector<8x128xf32>
    %cst_56 = arith.constant 0.000000e+00 : f32
    %247 = vector.shape_cast %240 : vector<8x1xi1> to vector<8x1xi1>
    %248 = vector.broadcast %247 : vector<8x1xi1> to vector<8x128xi1>
    %249 = vector.broadcast %cst_56 : f32 to vector<8x128xf32>
    %250 = arith.select %248, %237, %249 : vector<8x128xi1>, vector<8x128xf32>
    %251 = arith.index_cast %c5_i32 : i32 to index
    %c0_57 = arith.constant 0 : index
    %c0_58 = arith.constant 0 : index
    %252 = vector.load %arg6[%251, %c0_57, %c0_58] : memref<8x8x128xf32, #tpu.memory_space<vmem>>, vector<1x8x128xf32>
    %253 = vector.shape_cast %252 : vector<1x8x128xf32> to vector<8x128xf32>
    %254 = vector.shape_cast %250 : vector<8x128xf32> to vector<1x8x128xf32>
    tpu.vector_store %arg6[%251, %c0_57, %c0_58], %254 {strides = array<i32>} : memref<8x8x128xf32, #tpu.memory_space<vmem>>, vector<1x8x128xf32>,
    %c6_i32 = arith.constant 6 : i32
    %c8_i32_59 = arith.constant 8 : i32
    %255 = arith.muli %c6_i32, %c8_i32_59 : i32
    %256 = tpu.assume_multiple %255, 8 : i32
    %257 = arith.index_cast %256 : i32 to index
    %c0_60 = arith.constant 0 : index
    %258 = vector.load %arg12[%257, %c0_60] : memref<64x512xf32, #tpu.memory_space<vmem>>, vector<8x512xf32>
    %259 = arith.truncf %243 : vector<8x128xf32> to vector<8x128xbf16>
    %cst_61 = arith.constant dense<0.000000e+00> : vector<8x512xf32>
    %260 = tpu.matmul %259, %10, %cst_61 {dimension_numbers = #tpu.dot_dimension_numbers<[1], [0], [0], [1], [0, 0, 1, 1], [], []>} : vector<8x128xbf16>, vector<128x512xbf16>, vector<8x512xf32> -> vector<8x512xf32>
    %261 = arith.addf %258, %260 : vector<8x512xf32>
    %262 = vector.extract_strided_slice %261 {offsets = [0, 0], sizes = [8, 384], strides = [1, 1]} : vector<8x512xf32> to vector<8x384xf32>
    %263 = arith.negf %262 : vector<8x384xf32>
    %264 = math.exp %263 : vector<8x384xf32>
    %cst_62 = arith.constant 1.000000e+00 : f32
    %265 = vector.broadcast %cst_62 : f32 to vector<8x384xf32>
    %266 = arith.addf %265, %264 : vector<8x384xf32>
    %267 = arith.divf %265, %266 : vector<8x384xf32>
    %268 = vector.extract_strided_slice %261 {offsets = [0, 384], sizes = [8, 128], strides = [1, 1]} : vector<8x512xf32> to vector<8x128xf32>
    %269 = math.tanh %268 : vector<8x128xf32>
    %270 = vector.extract_strided_slice %267 {offsets = [0, 0], sizes = [8, 128], strides = [1, 1]} : vector<8x384xf32> to vector<8x128xf32>
    %271 = vector.extract_strided_slice %267 {offsets = [0, 128], sizes = [8, 128], strides = [1, 1]} : vector<8x384xf32> to vector<8x128xf32>
    %272 = vector.extract_strided_slice %267 {offsets = [0, 256], sizes = [8, 128], strides = [1, 1]} : vector<8x384xf32> to vector<8x128xf32>
    %273 = arith.mulf %271, %246 : vector<8x128xf32>
    %274 = arith.mulf %270, %269 : vector<8x128xf32>
    %275 = arith.addf %273, %274 : vector<8x128xf32>
    %276 = math.tanh %275 : vector<8x128xf32>
    %277 = arith.mulf %272, %276 : vector<8x128xf32>
    %278 = arith.addi %12, %c6_i32 : i32
    %279 = vector.broadcast %278 : i32 to vector<8x1xi32>
    %280 = arith.cmpi slt, %279, %11 : vector<8x1xi32>
    %281 = vector.shape_cast %280 : vector<8x1xi1> to vector<8x1xi1>
    %282 = vector.broadcast %281 : vector<8x1xi1> to vector<8x128xi1>
    %283 = arith.select %282, %277, %243 : vector<8x128xi1>, vector<8x128xf32>
    %284 = vector.shape_cast %280 : vector<8x1xi1> to vector<8x1xi1>
    %285 = vector.broadcast %284 : vector<8x1xi1> to vector<8x128xi1>
    %286 = arith.select %285, %275, %246 : vector<8x128xi1>, vector<8x128xf32>
    %cst_63 = arith.constant 0.000000e+00 : f32
    %287 = vector.shape_cast %280 : vector<8x1xi1> to vector<8x1xi1>
    %288 = vector.broadcast %287 : vector<8x1xi1> to vector<8x128xi1>
    %289 = vector.broadcast %cst_63 : f32 to vector<8x128xf32>
    %290 = arith.select %288, %277, %289 : vector<8x128xi1>, vector<8x128xf32>
    %291 = arith.index_cast %c6_i32 : i32 to index
    %c0_64 = arith.constant 0 : index
    %c0_65 = arith.constant 0 : index
    %292 = vector.load %arg6[%291, %c0_64, %c0_65] : memref<8x8x128xf32, #tpu.memory_space<vmem>>, vector<1x8x128xf32>
    %293 = vector.shape_cast %292 : vector<1x8x128xf32> to vector<8x128xf32>
    %294 = vector.shape_cast %290 : vector<8x128xf32> to vector<1x8x128xf32>
    tpu.vector_store %arg6[%291, %c0_64, %c0_65], %294 {strides = array<i32>} : memref<8x8x128xf32, #tpu.memory_space<vmem>>, vector<1x8x128xf32>,
    %c7_i32 = arith.constant 7 : i32
    %c8_i32_66 = arith.constant 8 : i32
    %295 = arith.muli %c7_i32, %c8_i32_66 : i32
    %296 = tpu.assume_multiple %295, 8 : i32
    %297 = arith.index_cast %296 : i32 to index
    %c0_67 = arith.constant 0 : index
    %298 = vector.load %arg12[%297, %c0_67] : memref<64x512xf32, #tpu.memory_space<vmem>>, vector<8x512xf32>
    %299 = arith.truncf %283 : vector<8x128xf32> to vector<8x128xbf16>
    %cst_68 = arith.constant dense<0.000000e+00> : vector<8x512xf32>
    %300 = tpu.matmul %299, %10, %cst_68 {dimension_numbers = #tpu.dot_dimension_numbers<[1], [0], [0], [1], [0, 0, 1, 1], [], []>} : vector<8x128xbf16>, vector<128x512xbf16>, vector<8x512xf32> -> vector<8x512xf32>
    %301 = arith.addf %298, %300 : vector<8x512xf32>
    %302 = vector.extract_strided_slice %301 {offsets = [0, 0], sizes = [8, 384], strides = [1, 1]} : vector<8x512xf32> to vector<8x384xf32>
    %303 = arith.negf %302 : vector<8x384xf32>
    %304 = math.exp %303 : vector<8x384xf32>
    %cst_69 = arith.constant 1.000000e+00 : f32
    %305 = vector.broadcast %cst_69 : f32 to vector<8x384xf32>
    %306 = arith.addf %305, %304 : vector<8x384xf32>
    %307 = arith.divf %305, %306 : vector<8x384xf32>
    %308 = vector.extract_strided_slice %301 {offsets = [0, 384], sizes = [8, 128], strides = [1, 1]} : vector<8x512xf32> to vector<8x128xf32>
    %309 = math.tanh %308 : vector<8x128xf32>
    %310 = vector.extract_strided_slice %307 {offsets = [0, 0], sizes = [8, 128], strides = [1, 1]} : vector<8x384xf32> to vector<8x128xf32>
    %311 = vector.extract_strided_slice %307 {offsets = [0, 128], sizes = [8, 128], strides = [1, 1]} : vector<8x384xf32> to vector<8x128xf32>
    %312 = vector.extract_strided_slice %307 {offsets = [0, 256], sizes = [8, 128], strides = [1, 1]} : vector<8x384xf32> to vector<8x128xf32>
    %313 = arith.mulf %311, %286 : vector<8x128xf32>
    %314 = arith.mulf %310, %309 : vector<8x128xf32>
    %315 = arith.addf %313, %314 : vector<8x128xf32>
    %316 = math.tanh %315 : vector<8x128xf32>
    %317 = arith.mulf %312, %316 : vector<8x128xf32>
    %318 = arith.addi %12, %c7_i32 : i32
    %319 = vector.broadcast %318 : i32 to vector<8x1xi32>
    %320 = arith.cmpi slt, %319, %11 : vector<8x1xi32>
    %321 = vector.shape_cast %320 : vector<8x1xi1> to vector<8x1xi1>
    %322 = vector.broadcast %321 : vector<8x1xi1> to vector<8x128xi1>
    %323 = arith.select %322, %317, %283 : vector<8x128xi1>, vector<8x128xf32>
    %324 = vector.shape_cast %320 : vector<8x1xi1> to vector<8x1xi1>
    %325 = vector.broadcast %324 : vector<8x1xi1> to vector<8x128xi1>
    %326 = arith.select %325, %315, %286 : vector<8x128xi1>, vector<8x128xf32>
    %cst_70 = arith.constant 0.000000e+00 : f32
    %327 = vector.shape_cast %320 : vector<8x1xi1> to vector<8x1xi1>
    %328 = vector.broadcast %327 : vector<8x1xi1> to vector<8x128xi1>
    %329 = vector.broadcast %cst_70 : f32 to vector<8x128xf32>
    %330 = arith.select %328, %317, %329 : vector<8x128xi1>, vector<8x128xf32>
    %331 = arith.index_cast %c7_i32 : i32 to index
    %c0_71 = arith.constant 0 : index
    %c0_72 = arith.constant 0 : index
    %332 = vector.load %arg6[%331, %c0_71, %c0_72] : memref<8x8x128xf32, #tpu.memory_space<vmem>>, vector<1x8x128xf32>
    %333 = vector.shape_cast %332 : vector<1x8x128xf32> to vector<8x128xf32>
    %334 = vector.shape_cast %330 : vector<8x128xf32> to vector<1x8x128xf32>
    tpu.vector_store %arg6[%331, %c0_71, %c0_72], %334 {strides = array<i32>} : memref<8x8x128xf32, #tpu.memory_space<vmem>>, vector<1x8x128xf32>,
    %c8_i32_73 = arith.constant 8 : i32
    %c0_74 = arith.constant 0 : index
    %c0_75 = arith.constant 0 : index
    %335 = vector.load %arg10[%c0_74, %c0_75] : memref<8x128xf32, #tpu.memory_space<vmem>>, vector<8x128xf32>
    tpu.vector_store %arg10[%c0_74, %c0_75], %323 {strides = array<i32>} : memref<8x128xf32, #tpu.memory_space<vmem>>, vector<8x128xf32>,
    %c0_76 = arith.constant 0 : index
    %c0_77 = arith.constant 0 : index
    %336 = vector.load %arg11[%c0_76, %c0_77] : memref<8x128xf32, #tpu.memory_space<vmem>>, vector<8x128xf32>
    tpu.vector_store %arg11[%c0_76, %c0_77], %326 {strides = array<i32>} : memref<8x128xf32, #tpu.memory_space<vmem>>, vector<8x128xf32>,
    %c2_i32_78 = arith.constant 2 : i32
    %337 = arith.cmpi eq, %arg0, %c2_i32_78 : i32
    %338 = arith.extui %337 : i1 to i32
    %c0_i32_79 = arith.constant 0 : i32
    %339 = arith.cmpi ne, %338, %c0_i32_79 : i32
    scf.if %339 {
      %c0_80 = arith.constant 0 : index
      %c0_81 = arith.constant 0 : index
      %340 = vector.load %arg10[%c0_80, %c0_81] : memref<8x128xf32, #tpu.memory_space<vmem>>, vector<8x128xf32>
      %c0_82 = arith.constant 0 : index
      %c0_83 = arith.constant 0 : index
      %341 = vector.load %arg7[%c0_82, %c0_83] : memref<8x128xf32, #tpu.memory_space<vmem>>, vector<8x128xf32>
      tpu.vector_store %arg7[%c0_82, %c0_83], %340 {strides = array<i32>} : memref<8x128xf32, #tpu.memory_space<vmem>>, vector<8x128xf32>,
      %c0_84 = arith.constant 0 : index
      %c0_85 = arith.constant 0 : index
      %342 = vector.load %arg10[%c0_84, %c0_85] : memref<8x128xf32, #tpu.memory_space<vmem>>, vector<8x128xf32>
      %343 = vector.shape_cast %342 : vector<8x128xf32> to vector<1x8x128xf32>
      %c0_86 = arith.constant 0 : index
      %c0_87 = arith.constant 0 : index
      %c0_88 = arith.constant 0 : index
      %344 = vector.load %arg8[%c0_86, %c0_87, %c0_88] : memref<1x8x128xf32, #tpu.memory_space<vmem>>, vector<1x8x128xf32>
      tpu.vector_store %arg8[%c0_86, %c0_87, %c0_88], %343 {strides = array<i32>} : memref<1x8x128xf32, #tpu.memory_space<vmem>>, vector<1x8x128xf32>,
      %c0_89 = arith.constant 0 : index
      %c0_90 = arith.constant 0 : index
      %345 = vector.load %arg11[%c0_89, %c0_90] : memref<8x128xf32, #tpu.memory_space<vmem>>, vector<8x128xf32>
      %346 = vector.shape_cast %345 : vector<8x128xf32> to vector<1x8x128xf32>
      %c0_91 = arith.constant 0 : index
      %c0_92 = arith.constant 0 : index
      %c0_93 = arith.constant 0 : index
      %347 = vector.load %arg9[%c0_91, %c0_92, %c0_93] : memref<1x8x128xf32, #tpu.memory_space<vmem>>, vector<1x8x128xf32>
      tpu.vector_store %arg9[%c0_91, %c0_92, %c0_93], %346 {strides = array<i32>} : memref<1x8x128xf32, #tpu.memory_space<vmem>>, vector<1x8x128xf32>,
    } else {
    }
    return
  }
  func.func @transform_0(%arg0: i32) -> (i32, i32) {
    %c0_i32 = arith.constant 0 : i32
    %c0_i32_0 = arith.constant 0 : i32
    return %arg0, %c0_i32 : i32, i32
  }
  func.func @transform_1(%arg0: i32) -> (i32, i32) {
    %c0_i32 = arith.constant 0 : i32
    %c0_i32_0 = arith.constant 0 : i32
    %c0_i32_1 = arith.constant 0 : i32
    return %c0_i32, %c0_i32_0 : i32, i32
  }
  func.func @transform_2(%arg0: i32) -> (i32, i32) {
    %c0_i32 = arith.constant 0 : i32
    %c0_i32_0 = arith.constant 0 : i32
    %c0_i32_1 = arith.constant 0 : i32
    return %c0_i32, %c0_i32_0 : i32, i32
  }
  func.func @transform_3(%arg0: i32) -> (i32, i32) {
    %c0_i32 = arith.constant 0 : i32
    %c0_i32_0 = arith.constant 0 : i32
    %c0_i32_1 = arith.constant 0 : i32
    return %c0_i32, %c0_i32_0 : i32, i32
  }
  func.func @transform_4(%arg0: i32) -> (i32, i32) {
    %c0_i32 = arith.constant 0 : i32
    %c0_i32_0 = arith.constant 0 : i32
    %c0_i32_1 = arith.constant 0 : i32
    return %c0_i32, %c0_i32_0 : i32, i32
  }
  func.func @transform_5(%arg0: i32) -> (i32, i32, i32) {
    %c0_i32 = arith.constant 0 : i32
    %c0_i32_0 = arith.constant 0 : i32
    %c0_i32_1 = arith.constant 0 : i32
    return %arg0, %c0_i32, %c0_i32_0 : i32, i32, i32
  }
  func.func @transform_6(%arg0: i32) -> (i32, i32) {
    %c0_i32 = arith.constant 0 : i32
    %c0_i32_0 = arith.constant 0 : i32
    %c0_i32_1 = arith.constant 0 : i32
    return %c0_i32, %c0_i32_0 : i32, i32
  }
  func.func @transform_7(%arg0: i32) -> (i32, i32, i32) {
    %c0_i32 = arith.constant 0 : i32
    %c0_i32_0 = arith.constant 0 : i32
    %c0_i32_1 = arith.constant 0 : i32
    %c0_i32_2 = arith.constant 0 : i32
    return %c0_i32, %c0_i32_0, %c0_i32_1 : i32, i32, i32
  }
  func.func @transform_8(%arg0: i32) -> (i32, i32, i32) {
    %c0_i32 = arith.constant 0 : i32
    %c0_i32_0 = arith.constant 0 : i32
    %c0_i32_1 = arith.constant 0 : i32
    %c0_i32_2 = arith.constant 0 : i32
    return %c0_i32, %c0_i32_0, %c0_i32_1 : i32, i32, i32
  }
}

</mosaic_0001>

<bundles_post_ra>
// kernel: lstm_rnn_forward.1
= control target key start
LH: loop header
LB: loop body
LE: loop exit
PB: predicated region body
PF: predicated region fallthrough
CT: control target
= control target key end

     0   :  { %s2668_s27 = smov 0   ;;  %s2670_s28 = smov 0   ;;  %s3619_s0 = inlined_call_operand.vmem [shape: bf16[160,16], index: 0, kind: input, shape index: {}]   ;;  %s3620_s1 = inlined_call_operand.vmem [shape: bf16[16,512], index: 1, kind: input, shape index: {}]   ;;  %s3621_s2 = inlined_call_operand.vmem [shape: bf16[128,512], index: 2, kind: input, shape index: {}]   ;;  %s3622_s3 = inlined_call_operand.vmem [shape: f32[1,512], index: 3, kind: input, shape index: {}]   ;;  %s3623_s4 = inlined_call_operand.vmem [shape: s32[8,1], index: 4, kind: input, shape index: {}]   ;;  %s3624_s5 = inlined_call_operand.vmem [shape: f32[20,8,128], index: 5, kind: output, shape index: {0}]   ;;  %s3625_s6 = inlined_call_operand.vmem [shape: f32[8,128], index: 6, kind: output, shape index: {1}]   ;;  %s3626_s7 = inlined_call_operand.vmem [shape: f32[1,8,128], index: 7, kind: output, shape index: {2}]   ;;  %s3627_s8 = inlined_call_operand.vmem [shape: f32[1,8,128], index: 8, kind: output, shape index: {3}]  }
   0x1   :  { %s2672_s29 = smov 0  }
   0x2 LB: > { %s2679_s30 = sadd.s32 4294967295, %s2587_s29   ;;  %s2681_s9 = sadd.s32 1, %s2587_s29   ;;  %s2587_s29 = sphi %s2672_s29, %s3679_s29   ;;  %s2583_s28 = sphi %s2670_s28, %s3678_s28   ;;  %s2579_s27 = sphi %s2668_s27, %s3677_s27  }
   0x3   : > { %s133_s10 = ssub.s32 %s2587_s29, %s2681_s9  ;;  %s136_s11 = sadd.s32 1, %s2583_s28 }
   0x4   : > { %p134_p0 = scmp.eq.s32.totalorder %s133_s10, 0  ;;  %p146_p1 = scmp.ne.s32.totalorder %s2583_s28, %s2579_s27 }
   0x5   : > { %p147_p2 = scmp.eq.s32.totalorder %s2679_s30, 2  ;;  %p2117_p3 = scmp.ge.s32.totalorder %s2587_s29, 1 }
   0x6   : > { %s2688_s12 = scalar_select %p134_p0, %s2583_s28, %s136_s11  }
   0x7   : > { %p2690_p4 = por %p147_p2, %p146_p1  ;;  %p263_p5 = scmp.lt.s32.totalorder %s2587_s29, 4 }
   0x9   : > { %p264_p6 = pnand %p2117_p3, %p263_p5 }
   0xb   : > { %267 = sbr.rel (%p264_p6) target bundleno = 2133 (0x855), region = 40 }
  0x10   : > { %s291_s14 = sand.u32 1, %s2579_s27   ;;  %s2695_s15 = sshll.u32 %s2679_s30, 3 }
  0x11   : > { %s2118_s16 = sshll.u32 %s291_s14, 6  ;;  %p305_p7 = scmp.lt.s32.totalorder %s2695_s15, 19 }
  0x12   : > { %s2704_s22 = scalar_lea.vmem [#allocation5], %s2118_s16   ;;  %p2121_p8 = scmp.ne.s32.totalorder %s2679_s30, 0 }
  0x13   : > { %s306_s17 = scalar_select %p305_p7, %s2695_s15, 19 }
  0x14   : > { %323 = sbr.rel (%p2121_p8) target bundleno = 27 (0x1b), region = 44 }
  0x15   : > { %s2120_s18 = sshll.u32 %s306_s17, 2 }
  0x16   : > { %s2702_s21 = scalar_lea.vmem %s3619_s0, %s2120_s18 }
  0x19   : > { %v2621_v0 = vmov 0.0  }
  0x1a   : > { %324 = vst [vmem:[#allocation2] sm:$0xff] %v2621_v0  ;;  %325 = vst [vmem:[#allocation3] sm:$0xff] %v2621_v0 }
  0x1b PF: > { %v2315_v1 = vld [vmem:[%s3620_s1 + $0x4] ss:$16 sps:$4 sm:$0xff]   ;;  %v2317_v2 = vld [vmem:[%s3620_s1 + $0xc] ss:$16 sps:$4 sm:$0xff]   ;;  %v3628_v3 = vmov 0   ;;  %vm400_vm0 = vcmask 130048   ;;  %v905_v35 = vstv %s2695_s15  ;;  %v340_v53 = vlaneseq }
  0x1c   : > { %445 = vmatprep.mubr.bf16.mxu0 %v3628_v3  ;;  %518 = vmatprep.mubr.bf16.mxu1 %v3628_v3  ;;  %v2319_v4 = vld [vmem:[%s3620_s1] ss:$16 sps:$4 sm:$0xff]   ;;  %v2320_v5 = vld [vmem:[%s3620_s1 + $0x8] ss:$16 sps:$4 sm:$0xff]   ;;  %v2727_v7 = vld [vmem:[%s3621_s2 + $0xe4] ss:$16 sps:$4 sm:$0xff]  }
  0x1d   : > { %427 = vmatprep.subr.bf16.mxu0 %v2315_v1  ;;  %2313 = vset.pattern.permute.xlu0 %v3628_v3  ;;  %v2321_v6 = vld [vmem:[%s2702_s21] sm:$0xff]   ;;  %v2732_v8 = vld [vmem:[%s3621_s2 + $0xec] ss:$16 sps:$4 sm:$0xff]   ;;  %v2743_v10 = vld [vmem:[%s3621_s2 + $0xe8] ss:$16 sps:$4 sm:$0xff]   ;;  %s1034_s27 = sadd.s32 1, %s2695_s15 }
  0x1e   : > { %500 = vmatprep.subr.bf16.mxu1 %v2317_v2  ;;  %2314 = vset.pattern.permute.xlu1 %v3628_v3  ;;  %v2737_v9 = vld [vmem:[%s3621_s2 + $0xe0] ss:$16 sps:$4 sm:$0xff]   ;;  %v2750_v11 = vld [vmem:[%s3621_s2 + $0xc4] ss:$16 sps:$4 sm:$0xff]   ;;  %v2757_v12 = vld [vmem:[%s3621_s2 + $0xcc] ss:$16 sps:$4 sm:$0xff]   ;;  %v1035_v42 = vstv %s1034_s27 }
  0x1f   : > { %428 = vmatpush1.bf16.msra.mxu0 %v2319_v4  ;;  %501 = vmatpush1.bf16.msra.mxu1 %v2320_v5  ;;  %v2762_v13 = vld [vmem:[%s3621_s2 + $0xc0] ss:$16 sps:$4 sm:$0xff]   ;;  %v2767_v14 = vld [vmem:[%s3621_s2 + $0xc8] ss:$16 sps:$4 sm:$0xff]   ;;  %v2777_v16 = vld [vmem:[%s3621_s2 + $0xa4] ss:$16 sps:$4 sm:$0xff]  }
  0x20   : > { %795 = vmatprep.subr.bf16.mxu0 %v2727_v7  ;;  %836 = vmatprep.subr.bf16.mxu1 %v2732_v8  ;;  %v2334_v15 = vld [vmem:[%s2702_s21 + $0x8] sm:$0xff]   ;;  %v2789_v18 = vld [vmem:[%s3621_s2 + $0xa0] ss:$16 sps:$4 sm:$0xff]   ;;  %v2801_v20 = vld [vmem:[%s3621_s2 + $0x84] ss:$16 sps:$4 sm:$0xff]   ;;  %s1427_s23 = sadd.s32 4, %s2695_s15 }
  0x21   : > { %v2783_v17 = vld [vmem:[%s3621_s2 + $0xac] ss:$16 sps:$4 sm:$0xff]   ;;  %v2794_v19 = vld [vmem:[%s3621_s2 + $0xa8] ss:$16 sps:$4 sm:$0xff]   ;;  %v2814_v22 = vld [vmem:[%s3621_s2 + $0x80] ss:$16 sps:$4 sm:$0xff]   ;;  %v1428_v47 = vstv %s1427_s23 }
  0x22   : > { %2130 = vmatmul.mubr.msk.bf16.vlgmr.msra.gmra.mxu0 %vm400_vm0, %v2321_v6  ;;  %2134 = vmatmul.mubr.msk.bf16.vlgmr.msra.gmra.mxu1 %vm400_vm0, %v2321_v6  ;;  %v2807_v21 = vld [vmem:[%s3621_s2 + $0x8c] ss:$16 sps:$4 sm:$0xff]   ;;  %v2820_v23 = vld [vmem:[%s3621_s2 + $0x88] ss:$16 sps:$4 sm:$0xff]   ;;  %v2828_v24 = vld [vmem:[%s3621_s2 + $0x64] ss:$16 sps:$4 sm:$0xff]  }
  0x23   : > { %796 = vmatpush1.bf16.msra.mxu0 %v2737_v9  ;;  %837 = vmatpush1.bf16.msra.mxu1 %v2743_v10  ;;  %v2835_v25 = vld [vmem:[%s3621_s2 + $0x6c] ss:$16 sps:$4 sm:$0xff]   ;;  %v2347_v26 = vld [vmem:[%s2702_s21 + $0x10] sm:$0xff]   ;;  %v2849_v28 = vld [vmem:[%s3621_s2 + $0x68] ss:$16 sps:$4 sm:$0xff]   ;;  %s1689_s29 = sadd.s32 6, %s2695_s15 }
  0x24   : > { %797 = vmatprep.subr.bf16.mxu0 %v2750_v11  ;;  %838 = vmatprep.subr.bf16.mxu1 %v2757_v12  ;;  %v2842_v27 = vld [vmem:[%s3621_s2 + $0x60] ss:$16 sps:$4 sm:$0xff]   ;;  %v2854_v29 = vld [vmem:[%s3621_s2 + $0x44] ss:$16 sps:$4 sm:$0xff]   ;;  %v2860_v30 = vld [vmem:[%s3621_s2 + $0x4c] ss:$16 sps:$4 sm:$0xff]   ;;  %v1690_v50 = vstv %s1689_s29 }
  0x25   : > { %455 = vmatprep.mubr.bf16.mxu0 %v3628_v3  ;;  %528 = vmatprep.mubr.bf16.mxu1 %v3628_v3  ;;  %v2868_v31 = vld [vmem:[%s3621_s2 + $0x40] ss:$16 sps:$4 sm:$0xff]   ;;  %v2873_v32 = vld [vmem:[%s3621_s2 + $0x48] ss:$16 sps:$4 sm:$0xff]   ;;  %v2881_v33 = vld [vmem:[%s3621_s2 + $0x24] ss:$16 sps:$4 sm:$0xff]  }
  0x26   : > { %v2888_v34 = vld [vmem:[%s3621_s2 + $0x2c] ss:$16 sps:$4 sm:$0xff]   ;;  %v2897_v37 = vld [vmem:[%s3621_s2 + $0x20] ss:$16 sps:$4 sm:$0xff]   ;;  %v2909_v39 = vld [vmem:[%s3621_s2 + $0x28] ss:$16 sps:$4 sm:$0xff]  }
  0x27   : > { %798 = vmatpush1.bf16.msra.mxu0 %v2762_v13  ;;  %839 = vmatpush1.bf16.msra.mxu1 %v2767_v14  ;;  %v2360_v36 = vld [vmem:[%s2702_s21 + $0x18] sm:$0xff]   ;;  %v2902_v38 = vld [vmem:[%s3623_s4] sm:$0xff]  ;;  %v341_v54 = vshrl.u32 %v340_v53, 7  ;;  %s1165_s14 = sadd.s32 2, %s2695_s15  ;;  %s1296_s16 = sadd.s32 3, %s2695_s15 }
  0x28   : > { %799 = vmatprep.subr.bf16.mxu0 %v2777_v16  ;;  %840 = vmatprep.subr.bf16.mxu1 %v2783_v17  ;;  %v2914_v40 = vld [vmem:[%s3621_s2 + $0x4] ss:$16 sps:$4 sm:$0xff]   ;;  %vm906_vm1 = vcmp.lt.s32.totalorder %v905_v35, %v2902_v38  ;;  %v2921_v41 = vld [vmem:[%s3621_s2 + $0xc] ss:$16 sps:$4 sm:$0xff]   ;;  %v2930_v43 = vld [vmem:[%s3621_s2] ss:$16 sps:$4 sm:$0xff]   ;;  %vm1036_vm2 = vcmp.lt.s32.totalorder %v1035_v42, %v2902_v38  ;;  %vm1429_vm3 = vcmp.lt.s32.totalorder %v1428_v47, %v2902_v38 }
  0x29   : > { %v2933_v44 = vld [vmem:[#allocation2] sm:$0xff]  ;;  %v907_v45 = vsel %vm906_vm1, 1, %v3628_v3  ;;  %v2941_v46 = vld [vmem:[%s3621_s2 + $0x8] ss:$16 sps:$4 sm:$0xff]   ;;  %v1037_v49 = vsel %vm1036_vm2, 1, %v3628_v3  ;;  %v1430_v51 = vsel %vm1429_vm3, 1, %v3628_v3  ;;  %vm1691_vm4 = vcmp.lt.s32.totalorder %v1690_v50, %v2902_v38 }
  0x2a   : > { %2131 = vmatmul.mubr.msk.bf16.gmra.mxu0 %vm400_vm0, %v2334_v15  ;;  %2135 = vmatmul.mubr.msk.bf16.gmra.mxu1 %vm400_vm0, %v2334_v15  ;;  %v634_v48 = vpack.c.bf16 %v2933_v44, %v2933_v44  ;;  %v1692_v52 = vsel %vm1691_vm4, 1, %v3628_v3  ;;  %v350_v55 = vsub.s32 2, %v341_v54  ;;  %v342_v56 = vsub.s32 0, %v341_v54  ;;  %v338_v58 = vld [vmem:[%s3622_s3] sm:$0xf]  ;;  %s1558_s17 = sadd.s32 5, %s2695_s15 }
  0x2b   : > { %800 = vmatpush1.bf16.msra.mxu0 %v2789_v18  ;;  %465 = vmatprep.mubr.bf16.mxu0 %v3628_v3  ;;  %v354_v57 = vsub.s32 3, %v341_v54  ;;  %v346_v62 = vsub.s32 1, %v341_v54  ;;  %s1820_s21 = sadd.s32 7, %s2695_s15  ;;  %p2202_p9 = scmp.ne.s32.totalorder %s2679_s30, 2 }
  0x2c   : > { %841 = vmatpush1.bf16.msra.mxu1 %v2794_v19  ;;  %801 = vmatprep.subr.bf16.mxu0 %v2801_v20  ;;  %v2999_v61 = vrot.slane %v338_v58, %v350_v55  ;;  %v343_v1 = vrot.slane %v338_v58, %v342_v56 }
  0x2d   : > { %842 = vmatprep.subr.bf16.mxu1 %v2807_v21  ;;  %538 = vmatprep.mubr.bf16.mxu1 %v3628_v3  ;;  %v3005_v2 = vrot.slane %v338_v58, %v354_v57  ;;  %v347_v6 = vrot.slane %v338_v58, %v346_v62 }
  0x2e   : > { %909 = vperm.xlu0 %2313, %v907_v45  }
  0x2f   : > { %802 = vmatpush1.bf16.msra.mxu0 %v2814_v22 }
  0x30   : > { %843 = vmatpush1.bf16.msra.mxu1 %v2820_v23  ;;  %803 = vmatprep.subr.bf16.mxu0 %v2828_v24 }
  0x31   : > { %844 = vmatprep.subr.bf16.mxu1 %v2835_v25 }
  0x32   : > { %2132 = vmatmul.mubr.msk.bf16.gmra.mxu0 %vm400_vm0, %v2347_v26  ;;  %2136 = vmatmul.mubr.msk.bf16.gmra.mxu1 %vm400_vm0, %v2347_v26 }
  0x33   : > { %804 = vmatpush1.bf16.msra.mxu0 %v2842_v27  ;;  %475 = vmatprep.mubr.bf16.mxu0 %v3628_v3 }
  0x34   : > { %845 = vmatpush1.bf16.msra.mxu1 %v2849_v28  ;;  %805 = vmatprep.subr.bf16.mxu0 %v2854_v29 }
  0x35   : > { %846 = vmatprep.subr.bf16.mxu1 %v2860_v30  ;;  %548 = vmatprep.mubr.bf16.mxu1 %v3628_v3 }
  0x36   : > { %1039 = vperm.xlu0 %2313, %v1037_v49  }
  0x37   : > { %806 = vmatpush1.bf16.msra.mxu0 %v2868_v31 }
  0x38   : > { %847 = vmatpush1.bf16.msra.mxu1 %v2873_v32  ;;  %807 = vmatprep.subr.bf16.mxu0 %v2881_v33 }
  0x39   : > { %848 = vmatprep.subr.bf16.mxu1 %v2888_v34 }
  0x3a   : > { %2133 = vmatmul.mubr.msk.bf16.gmra.mxu0 %vm400_vm0, %v2360_v36  ;;  %2137 = vmatmul.mubr.msk.bf16.gmra.mxu1 %vm400_vm0, %v2360_v36 }
  0x3b   : > { %808 = vmatpush1.bf16.msra.mxu0 %v2897_v37  ;;  %827 = vmatprep.mubr.bf16.mxu0 %v3628_v3 }
  0x3c   : > { %849 = vmatpush1.bf16.msra.mxu1 %v2909_v39  ;;  %809 = vmatprep.subr.bf16.mxu0 %v2914_v40 }
  0x3d   : > { %850 = vmatprep.subr.bf16.mxu1 %v2921_v41  ;;  %868 = vmatprep.mubr.bf16.mxu1 %v3628_v3 }
  0x3e   : > { %1432 = vperm.xlu0 %2313, %v1430_v51  }
  0x3f   : > { %810 = vmatpush1.bf16.msra.mxu0 %v2930_v43 }
  0x40   : > { %851 = vmatpush1.bf16.msra.mxu1 %v2941_v46  ;;  %924 = vmatprep.subr.bf16.mxu0 %v2727_v7 }
  0x41   : > { %965 = vmatprep.subr.bf16.mxu1 %v2732_v8 }
  0x42   : > { %828 = vmatmul.mubr.bf16.vlgmr.msra.gmra.mxu0 %v634_v48  ;;  %1694 = vperm.xlu0 %2313, %v1692_v52  }
  0x43   : > { %869 = vmatmul.mubr.bf16.vlgmr.msra.gmra.mxu1 %v634_v48  ;;  %925 = vmatpush1.bf16.msra.mxu0 %v2737_v9 }
  0x44   : > { %966 = vmatpush1.bf16.msra.mxu1 %v2743_v10  ;;  %926 = vmatprep.subr.bf16.mxu0 %v2750_v11 }
  0x45   : > { %967 = vmatprep.subr.bf16.mxu1 %v2757_v12  ;;  %956 = vmatprep.mubr.bf16.mxu0 %v3628_v3 }
  0x46   : > { %997 = vmatprep.mubr.bf16.mxu1 %v3628_v3 }
  0x47   : > { %927 = vmatpush1.bf16.msra.mxu0 %v2762_v13 }
  0x48   : > { %968 = vmatpush1.bf16.msra.mxu1 %v2767_v14  ;;  %928 = vmatprep.subr.bf16.mxu0 %v2777_v16 }
  0x49   : > { %969 = vmatprep.subr.bf16.mxu1 %v2783_v17 }
  0x4b   : > { %929 = vmatpush1.bf16.msra.mxu0 %v2789_v18 }
  0x4c   : > { %970 = vmatpush1.bf16.msra.mxu1 %v2794_v19  ;;  %930 = vmatprep.subr.bf16.mxu0 %v2801_v20 }
  0x4d   : > { %971 = vmatprep.subr.bf16.mxu1 %v2807_v21 }
  0x4f   : > { %931 = vmatpush1.bf16.msra.mxu0 %v2814_v22 }
  0x50   : > { %972 = vmatpush1.bf16.msra.mxu1 %v2820_v23  ;;  %932 = vmatprep.subr.bf16.mxu0 %v2828_v24 }
  0x51   : > { %973 = vmatprep.subr.bf16.mxu1 %v2835_v25 }
  0x53   : > { %933 = vmatpush1.bf16.msra.mxu0 %v2842_v27 }
  0x54   : > { %974 = vmatpush1.bf16.msra.mxu1 %v2849_v28  ;;  %934 = vmatprep.subr.bf16.mxu0 %v2854_v29 }
  0x55   : > { %975 = vmatprep.subr.bf16.mxu1 %v2860_v30 }
  0x57   : > { %935 = vmatpush1.bf16.msra.mxu0 %v2868_v31 }
  0x58   : > { %976 = vmatpush1.bf16.msra.mxu1 %v2873_v32  ;;  %936 = vmatprep.subr.bf16.mxu0 %v2881_v33 }
  0x59   : > { %977 = vmatprep.subr.bf16.mxu1 %v2888_v34 }
  0x5b   : > { %937 = vmatpush1.bf16.msra.mxu0 %v2897_v37 }
  0x5c   : > { %978 = vmatpush1.bf16.msra.mxu1 %v2909_v39  ;;  %938 = vmatprep.subr.bf16.mxu0 %v2914_v40 }
  0x5d   : > { %979 = vmatprep.subr.bf16.mxu1 %v2921_v41 }
  0x5f   : > { %939 = vmatpush1.bf16.msra.mxu0 %v2930_v43 }
  0x60   : > { %980 = vmatpush1.bf16.msra.mxu1 %v2941_v46  ;;  %1055 = vmatprep.subr.bf16.mxu0 %v2727_v7 }
  0x61   : > { %1096 = vmatprep.subr.bf16.mxu1 %v2732_v8 }
  0xe2   : > { %v2995_v59 = vpop.f32.mrf.mxu0  ;;  %v2997_v60 = vpop.f32.mrf.mxu1 }
  0xe4   : > { %v3001_v63 = vpop.f32.mrf.mxu0  ;;  %v3003_v0 = vpop.f32.mrf.mxu1 }
  0xe6   : > { %v451_v4 = vpop.f32.mrf.mxu0  ;;  %v524_v5 = vpop.f32.mrf.mxu1 }
  0xe7   : > { %v3007_v15 = vadd.f32 %v451_v4, %v343_v1  ;;  %v3010_v26 = vadd.f32 %v524_v5, %v2999_v61 }
  0xe8   : > { %v453_v35 = vpop.f32.mrf.mxu0  ;;  %v526_v36 = vpop.f32.mrf.mxu1 }
  0xe9   : > { %v3012_v42 = vadd.f32 %v453_v35, %v347_v6  ;;  %v3015_v45 = vadd.f32 %v526_v36, %v3005_v2 }
  0xea   : > { %v457_v47 = vpop.f32.mrf.mxu0  ;;  %v530_v48 = vpop.f32.mrf.mxu1 }
  0xeb   : > { %v3017_v49 = vadd.f32 %v457_v47, %v343_v1  ;;  %v3020_v50 = vadd.f32 %v530_v48, %v2999_v61 }
  0xec   : > { %v459_v51 = vpop.f32.mrf.mxu0  ;;  %v532_v52 = vpop.f32.mrf.mxu1 }
  0xed   : > { %3631 = vst [vmem:[#allocation6_spill] sm:$0xff] %v3020_v50  ;;  %v3022_v53 = vadd.f32 %v459_v51, %v347_v6  ;;  %v3025_v54 = vadd.f32 %v532_v52, %v3005_v2 }
  0xee   : > { %v461_v55 = vpop.f32.mrf.mxu0  ;;  %v534_v56 = vpop.f32.mrf.mxu1 }
  0xef   : > { %3632 = vst [vmem:[#allocation7_spill] sm:$0xff] %v3022_v53  ;;  %3633 = vst [vmem:[#allocation8_spill] sm:$0xff] %v3025_v54  ;;  %v3027_v57 = vadd.f32 %v461_v55, %v343_v1  ;;  %v3030_v58 = vadd.f32 %v534_v56, %v2999_v61 }
  0xf0   : > { %v463_v62 = vpop.f32.mrf.mxu0  ;;  %v536_v4 = vpop.f32.mrf.mxu1 }
  0xf1   : > { %3634 = vst [vmem:[#allocation9_spill] sm:$0xff] %v3027_v57  ;;  %3635 = vst [vmem:[#allocation10_spill] sm:$0xff] %v3030_v58  ;;  %v3032_v5 = vadd.f32 %v463_v62, %v347_v6  ;;  %v3035_v35 = vadd.f32 %v536_v4, %v3005_v2 }
  0xf2   : > { %v467_v36 = vpop.f32.mrf.mxu0  ;;  %v540_v47 = vpop.f32.mrf.mxu1 }
  0xf3   : > { %3636 = vst [vmem:[#allocation11_spill] sm:$0xff] %v3032_v5  ;;  %3637 = vst [vmem:[#allocation12_spill] sm:$0xff] %v3035_v35  ;;  %v3037_v48 = vadd.f32 %v467_v36, %v343_v1  ;;  %v3040_v51 = vadd.f32 %v540_v47, %v2999_v61 }
  0xf4   : > { %v469_v52 = vpop.f32.mrf.mxu0  ;;  %v542_v55 = vpop.f32.mrf.mxu1 }
  0xf5   : > { %3638 = vst [vmem:[#allocation13_spill] sm:$0xff] %v3037_v48  ;;  %3639 = vst [vmem:[#allocation14_spill] sm:$0xff] %v3040_v51  ;;  %v3042_v3 = vadd.f32 %v469_v52, %v347_v6  ;;  %v3045_v56 = vadd.f32 %v542_v55, %v3005_v2 }
  0xf6   : > { %v471_v58 = vpop.f32.mrf.mxu0  ;;  %v544_v62 = vpop.f32.mrf.mxu1 }
  0xf7   : > { %3640 = vst [vmem:[#allocation15_spill] sm:$0xff] %v3042_v3  ;;  %3641 = vst [vmem:[#allocation16_spill] sm:$0xff] %v3045_v56  ;;  %v3047_v5 = vadd.f32 %v471_v58, %v343_v1  ;;  %v3050_v4 = vadd.f32 %v544_v62, %v2999_v61 }
  0xf8   : > { %v473_v35 = vpop.f32.mrf.mxu0  ;;  %v546_v36 = vpop.f32.mrf.mxu1 }
  0xf9   : > { %3642 = vst [vmem:[#allocation17_spill] sm:$0xff] %v3047_v5  ;;  %3643 = vst [vmem:[#allocation18_spill] sm:$0xff] %v3050_v4  ;;  %v3052_v48 = vadd.f32 %v473_v35, %v347_v6  ;;  %v3055_v47 = vadd.f32 %v546_v36, %v3005_v2 }
  0xfa   : > { %v477_v51 = vpop.f32.mrf.mxu0  ;;  %v550_v52 = vpop.f32.mrf.mxu1 }
  0xfb   : > { %3644 = vst [vmem:[#allocation19_spill] sm:$0xff] %v3052_v48  ;;  %3645 = vst [vmem:[#allocation20_spill] sm:$0xff] %v3055_v47  ;;  %v3057_v3 = vadd.f32 %v477_v51, %v343_v1  ;;  %v3060_v55 = vadd.f32 %v550_v52, %v2999_v61 }
  0xfc   : > { %v479_v56 = vpop.f32.mrf.mxu0  ;;  %v552_v58 = vpop.f32.mrf.mxu1 }
  0xfd   : > { %3646 = vst [vmem:[#allocation21_spill] sm:$0xff] %v3057_v3  ;;  %3647 = vst [vmem:[#allocation22_spill] sm:$0xff] %v3060_v55  ;;  %v3062_v5 = vadd.f32 %v479_v56, %v347_v6  ;;  %v3065_v62 = vadd.f32 %v552_v58, %v3005_v2  ;;  %v448_v3 = vadd.f32 %v2995_v59, %v343_v1 }
  0xfe   : > { %v481_v4 = vpop.f32.mrf.mxu0  ;;  %v554_v35 = vpop.f32.mrf.mxu1  ;;  %v450_v58 = vadd.f32 %v3001_v63, %v347_v6  ;;  %v523_v63 = vadd.f32 %v3003_v0, %v3005_v2 }
  0xff   : > { %3648 = vst [vmem:[#allocation23_spill] sm:$0xff] %v3062_v5  ;;  %3649 = vst [vmem:[#allocation24_spill] sm:$0xff] %v3065_v62  ;;  %v3067_v48 = vadd.f32 %v481_v4, %v343_v1  ;;  %v3070_v36 = vadd.f32 %v554_v35, %v2999_v61  ;;  %v521_v1 = vadd.f32 %v2997_v60, %v2999_v61  ;;  %v910_v60 = vpop.permute.xlu0 %909 }
 0x100   : > { %v483_v47 = vpop.f32.mrf.mxu0  ;;  %v556_v51 = vpop.f32.mrf.mxu1  ;;  %vm911_vm5 = vcmp.eq.s32.totalorder %v910_v60, 1 }
 0x101   : > { %3650 = vst [vmem:[#allocation25_spill] sm:$0xff] %v3067_v48  ;;  %3651 = vst [vmem:[#allocation26_spill] sm:$0xff] %v3070_v36  ;;  %v3073_v52 = vadd.f32 %v483_v47, %v347_v6  ;;  %v3076_v55 = vadd.f32 %v556_v51, %v3005_v2 }
 0x102   : > { %v829_v56 = vpop.f32.mrf.mxu0 }
 0x103   : > { %v877_v62 = vadd.f32 %v829_v56, %v448_v3  ;;  %v870_v5 = vpop.f32.mrf.mxu1 }
 0x104   : > { %v831_v57 = vpop.f32.mrf.mxu0  ;;  %v879_v47 = vadd.f32 %v870_v5, %v521_v1 }
 0x105   : > { %v2171_v4 = vmul.f32 -1.442695, %v877_v62  ;;  %v878_v48 = vadd.f32 %v831_v57, %v450_v58  ;;  %v872_v54 = vpop.f32.mrf.mxu1 }
 0x106   : > { %v833_v35 = vpop.f32.mrf.mxu0  ;;  %v2173_v3 = vmul.f32 -1.442695, %v879_v47  ;;  %v880_v51 = vadd.f32 %v872_v54, %v523_v63 }
 0x107   : > { %2373 = vpow2.f32 %v2171_v4  ;;  %v2172_v36 = vmul.f32 -1.442695, %v878_v48  ;;  %v874_v50 = vpop.f32.mrf.mxu1  ;;  %v626_v48 = vld [vmem:[#allocation3] sm:$0xff] }
 0x108   : > { %v834_v53 = vpop.f32.mrf.mxu0 }
 0x109   : > { %2375 = vpow2.f32 %v2172_v36  ;;  %v875_v59 = vpop.f32.mrf.mxu1 }
 0x10a   : > { %2377 = vpow2.f32 %v2173_v3  ;;  %v3652_v3 = vmov 0  }
 0x114   : > { %v2374_v6 = vpop.eup %2373 }
 0x115   : > { %v890_v62 = vadd.f32 1.0, %v2374_v6  ;;  %v1297_v6 = vstv %s1296_s16 }
 0x116   : > { %v2376_v57 = vpop.eup %2375  ;;  %vm1298_vm7 = vcmp.lt.s32.totalorder %v1297_v6, %v2902_v38 }
 0x117   : > { %2379 = vrcp.f32 %v890_v62  ;;  %v891_v56 = vadd.f32 1.0, %v2376_v57  ;;  %v2378_v50 = vpop.eup %2377  ;;  %v1559_v62 = vstv %s1558_s17  ;;  %v1299_v57 = vsel %vm1298_vm7, 1, %v3652_v3 }
 0x118   : > { %2381 = vtanh.f32 %v880_v51  ;;  %v892_v5 = vadd.f32 1.0, %v2378_v50  ;;  %vm1560_vm8 = vcmp.lt.s32.totalorder %v1559_v62, %v2902_v38 }
 0x119   : > { %2383 = vrcp.f32 %v891_v56  ;;  %v1821_v56 = vstv %s1820_s21  ;;  %v1561_v50 = vsel %vm1560_vm8, 1, %v3652_v3 }
 0x11a   : > { %2385 = vrcp.f32 %v892_v5  ;;  %vm1822_vm9 = vcmp.lt.s32.totalorder %v1821_v56, %v2902_v38 }
 0x124   : > { %v2380_v53 = vpop.eup %2379 }
 0x125   : > { %v2382_v36 = vpop.eup %2381 }
 0x126   : > { %v2384_v61 = vpop.eup %2383  ;;  %v901_v0 = vmul.f32 %v2382_v36, %v2380_v53  ;;  %v1823_v53 = vsel %vm1822_vm9, 1, %v3652_v3 }
 0x127   : > { %v900_v58 = vmul.f32 %v2384_v61, %v626_v48  ;;  %v2386_v4 = vpop.eup %2385 }
 0x129   : > { %v902_v2 = vadd.f32 %v901_v0, %v900_v58 }
 0x12b   : > { %2387 = vtanh.f32 %v902_v2  ;;  %v3083_v54 = vsel %vm911_vm5, %v902_v2, %v626_v48 }
 0x138   : > { %v2388_v35 = vpop.eup %2387 }
 0x139   : > { %v904_v59 = vmul.f32 %v2388_v35, %v2386_v4 }
 0x13b   : > { %v3086_v1 = vsel %vm911_vm5, %v904_v59, %v2933_v44  ;;  %v914_v47 = vsel %vm911_vm5, %v904_v59, 0.0  ;;  %v1166_v44 = vstv %s1165_s14 }
 0x13c   : > { %915 = vst [vmem:[%s2704_s22] sm:$0xff] %v914_v47  ;;  %v923_v63 = vpack.c.bf16 %v3086_v1, %v3086_v1  ;;  %vm1167_vm6 = vcmp.lt.s32.totalorder %v1166_v44, %v2902_v38 }
 0x13d   : > { %v1168_v51 = vsel %vm1167_vm6, 1, %v3652_v3 }
 0x13e   : > { %957 = vmatmul.mubr.bf16.vlgmr.msra.gmra.mxu0 %v923_v63  ;;  %998 = vmatmul.mubr.bf16.vlgmr.msra.gmra.mxu1 %v923_v63 }
 0x13f   : > { %1056 = vmatpush1.bf16.msra.mxu0 %v2737_v9  ;;  %1097 = vmatpush1.bf16.msra.mxu1 %v2743_v10 }
 0x140   : > { %1057 = vmatprep.subr.bf16.mxu0 %v2750_v11  ;;  %1098 = vmatprep.subr.bf16.mxu1 %v2757_v12 }
 0x141   : > { %1087 = vmatprep.mubr.bf16.mxu0 %v3652_v3  ;;  %1128 = vmatprep.mubr.bf16.mxu1 %v3652_v3 }
 0x142   : > { %1170 = vperm.xlu1 %2314, %v1168_v51  }
 0x143   : > { %1058 = vmatpush1.bf16.msra.mxu0 %v2762_v13  ;;  %1099 = vmatpush1.bf16.msra.mxu1 %v2767_v14 }
 0x144   : > { %1059 = vmatprep.subr.bf16.mxu0 %v2777_v16  ;;  %1100 = vmatprep.subr.bf16.mxu1 %v2783_v17 }
 0x146   : > { %1301 = vperm.xlu1 %2314, %v1299_v57  }
 0x147   : > { %1060 = vmatpush1.bf16.msra.mxu0 %v2789_v18  ;;  %1101 = vmatpush1.bf16.msra.mxu1 %v2794_v19 }
 0x148   : > { %1061 = vmatprep.subr.bf16.mxu0 %v2801_v20  ;;  %1102 = vmatprep.subr.bf16.mxu1 %v2807_v21 }
 0x14a   : > { %1563 = vperm.xlu1 %2314, %v1561_v50  }
 0x14b   : > { %1062 = vmatpush1.bf16.msra.mxu0 %v2814_v22  ;;  %1103 = vmatpush1.bf16.msra.mxu1 %v2820_v23 }
 0x14c   : > { %1063 = vmatprep.subr.bf16.mxu0 %v2828_v24  ;;  %1104 = vmatprep.subr.bf16.mxu1 %v2835_v25 }
 0x14e   : > { %1825 = vperm.xlu1 %2314, %v1823_v53  }
 0x14f   : > { %1064 = vmatpush1.bf16.msra.mxu0 %v2842_v27  ;;  %1105 = vmatpush1.bf16.msra.mxu1 %v2849_v28 }
 0x150   : > { %1065 = vmatprep.subr.bf16.mxu0 %v2854_v29  ;;  %1106 = vmatprep.subr.bf16.mxu1 %v2860_v30 }
 0x153   : > { %1066 = vmatpush1.bf16.msra.mxu0 %v2868_v31  ;;  %1107 = vmatpush1.bf16.msra.mxu1 %v2873_v32 }
 0x154   : > { %1067 = vmatprep.subr.bf16.mxu0 %v2881_v33  ;;  %1108 = vmatprep.subr.bf16.mxu1 %v2888_v34 }
 0x157   : > { %1068 = vmatpush1.bf16.msra.mxu0 %v2897_v37  ;;  %1109 = vmatpush1.bf16.msra.mxu1 %v2909_v39 }
 0x158   : > { %1069 = vmatprep.subr.bf16.mxu0 %v2914_v40  ;;  %1110 = vmatprep.subr.bf16.mxu1 %v2921_v41 }
 0x15b   : > { %1070 = vmatpush1.bf16.msra.mxu0 %v2930_v43  ;;  %1111 = vmatpush1.bf16.msra.mxu1 %v2941_v46 }
 0x15c   : > { %1186 = vmatprep.subr.bf16.mxu0 %v2727_v7  ;;  %1227 = vmatprep.subr.bf16.mxu1 %v2732_v8 }
 0x1fe   : > { %v958_v48 = vpop.f32.mrf.mxu0  ;;  %v999_v36 = vpop.f32.mrf.mxu1 }
 0x1ff   : > { %v1006_v60 = vadd.f32 %v958_v48, %v3007_v15  ;;  %v1008_v38 = vadd.f32 %v999_v36, %v3010_v26  ;;  %v1040_v36 = vpop.permute.xlu0 %1039 }
 0x200   : > { %v960_v61 = vpop.f32.mrf.mxu0  ;;  %v1001_v5 = vpop.f32.mrf.mxu1  ;;  %vm1041_vm10 = vcmp.eq.s32.totalorder %v1040_v36, 1 }
 0x201   : > { %v2174_v58 = vmul.f32 -1.442695, %v1006_v60  ;;  %v1007_v0 = vadd.f32 %v960_v61, %v3012_v42  ;;  %v2176_v63 = vmul.f32 -1.442695, %v1008_v38  ;;  %v1009_v44 = vadd.f32 %v1001_v5, %v3015_v45 }
 0x202   : > { %v962_v2 = vpop.f32.mrf.mxu0  ;;  %v1003_v4 = vpop.f32.mrf.mxu1 }
 0x203   : > { %2389 = vpow2.f32 %v2174_v58  ;;  %v2175_v35 = vmul.f32 -1.442695, %v1007_v0 }
 0x204   : > { %v963_v59 = vpop.f32.mrf.mxu0  ;;  %v1004_v47 = vpop.f32.mrf.mxu1 }
 0x205   : > { %2391 = vpow2.f32 %v2175_v35 }
 0x206   : > { %2393 = vpow2.f32 %v2176_v63  ;;  %v3653_v63 = vld [vmem:[#allocation7_spill] sm:$0xff] }
 0x207   : > { %2395 = vtanh.f32 %v1009_v44 }
 0x210   : > { %v2390_v6 = vpop.eup %2389 }
 0x211   : > { %v1019_v51 = vadd.f32 1.0, %v2390_v6 }
 0x212   : > { %v2392_v15 = vpop.eup %2391 }
 0x213   : > { %2397 = vrcp.f32 %v1019_v51  ;;  %v1020_v62 = vadd.f32 1.0, %v2392_v15  ;;  %v2394_v42 = vpop.eup %2393 }
 0x214   : > { %v2396_v57 = vpop.eup %2395  ;;  %v1021_v48 = vadd.f32 1.0, %v2394_v42 }
 0x215   : > { %2399 = vrcp.f32 %v1020_v62 }
 0x216   : > { %2401 = vrcp.f32 %v1021_v48 }
 0x220   : > { %v2398_v56 = vpop.eup %2397 }
 0x221   : > { %v1030_v50 = vmul.f32 %v2398_v56, %v2396_v57  ;;  %v3654_v57 = vld [vmem:[#allocation6_spill] sm:$0xff] }
 0x222   : > { %v2400_v53 = vpop.eup %2399 }
 0x223   : > { %v1029_v26 = vmul.f32 %v2400_v53, %v3083_v54  ;;  %v2402_v61 = vpop.eup %2401 }
 0x225   : > { %v1031_v60 = vadd.f32 %v1030_v50, %v1029_v26 }
 0x227   : > { %2403 = vtanh.f32 %v1031_v60  ;;  %v3143_v45 = vsel %vm1041_vm10, %v1031_v60, %v3083_v54 }
 0x234   : > { %v2404_v5 = vpop.eup %2403 }
 0x235   : > { %v1033_v58 = vmul.f32 %v2404_v5, %v2402_v61  ;;  %v1171_v5 = vpop.permute.xlu1 %1170 }
 0x236   : > { %vm1172_vm11 = vcmp.eq.s32.totalorder %v1171_v5, 1 }
 0x237   : > { %v3146_v0 = vsel %vm1041_vm10, %v1033_v58, %v3086_v1  ;;  %v1044_v2 = vsel %vm1041_vm10, %v1033_v58, 0.0 }
 0x238   : > { %2177 = vst [vmem:[%s2704_s22 + $0x8] sm:$0xff] %v1044_v2  ;;  %v1054_v4 = vpack.c.bf16 %v3146_v0, %v3146_v0 }
 0x23a   : > { %1088 = vmatmul.mubr.bf16.vlgmr.msra.gmra.mxu0 %v1054_v4  ;;  %1129 = vmatmul.mubr.bf16.vlgmr.msra.gmra.mxu1 %v1054_v4 }
 0x23b   : > { %1187 = vmatpush1.bf16.msra.mxu0 %v2737_v9  ;;  %1228 = vmatpush1.bf16.msra.mxu1 %v2743_v10 }
 0x23c   : > { %1188 = vmatprep.subr.bf16.mxu0 %v2750_v11  ;;  %1229 = vmatprep.subr.bf16.mxu1 %v2757_v12 }
 0x23d   : > { %1218 = vmatprep.mubr.bf16.mxu0 %v3652_v3  ;;  %1259 = vmatprep.mubr.bf16.mxu1 %v3652_v3 }
 0x23f   : > { %1189 = vmatpush1.bf16.msra.mxu0 %v2762_v13  ;;  %1230 = vmatpush1.bf16.msra.mxu1 %v2767_v14 }
 0x240   : > { %1190 = vmatprep.subr.bf16.mxu0 %v2777_v16  ;;  %1231 = vmatprep.subr.bf16.mxu1 %v2783_v17 }
 0x243   : > { %1191 = vmatpush1.bf16.msra.mxu0 %v2789_v18  ;;  %1232 = vmatpush1.bf16.msra.mxu1 %v2794_v19 }
 0x244   : > { %1192 = vmatprep.subr.bf16.mxu0 %v2801_v20  ;;  %1233 = vmatprep.subr.bf16.mxu1 %v2807_v21 }
 0x247   : > { %1193 = vmatpush1.bf16.msra.mxu0 %v2814_v22  ;;  %1234 = vmatpush1.bf16.msra.mxu1 %v2820_v23 }
 0x248   : > { %1194 = vmatprep.subr.bf16.mxu0 %v2828_v24  ;;  %1235 = vmatprep.subr.bf16.mxu1 %v2835_v25 }
 0x24b   : > { %1195 = vmatpush1.bf16.msra.mxu0 %v2842_v27  ;;  %1236 = vmatpush1.bf16.msra.mxu1 %v2849_v28 }
 0x24c   : > { %1196 = vmatprep.subr.bf16.mxu0 %v2854_v29  ;;  %1237 = vmatprep.subr.bf16.mxu1 %v2860_v30 }
 0x24f   : > { %1197 = vmatpush1.bf16.msra.mxu0 %v2868_v31  ;;  %1238 = vmatpush1.bf16.msra.mxu1 %v2873_v32 }
 0x250   : > { %1198 = vmatprep.subr.bf16.mxu0 %v2881_v33  ;;  %1239 = vmatprep.subr.bf16.mxu1 %v2888_v34 }
 0x253   : > { %1199 = vmatpush1.bf16.msra.mxu0 %v2897_v37  ;;  %1240 = vmatpush1.bf16.msra.mxu1 %v2909_v39 }
 0x254   : > { %1200 = vmatprep.subr.bf16.mxu0 %v2914_v40  ;;  %1241 = vmatprep.subr.bf16.mxu1 %v2921_v41 }
 0x257   : > { %1201 = vmatpush1.bf16.msra.mxu0 %v2930_v43  ;;  %1242 = vmatpush1.bf16.msra.mxu1 %v2941_v46 }
 0x258   : > { %1317 = vmatprep.subr.bf16.mxu0 %v2727_v7  ;;  %1358 = vmatprep.subr.bf16.mxu1 %v2732_v8  ;;  %v3655_v8 = vld [vmem:[#allocation8_spill] sm:$0xff] }
 0x2fa   : > { %v1089_v54 = vpop.f32.mrf.mxu0  ;;  %v1130_v1 = vpop.f32.mrf.mxu1 }
 0x2fb   : > { %v1137_v35 = vadd.f32 %v1089_v54, %v3017_v49  ;;  %v1139_v7 = vadd.f32 %v1130_v1, %v3654_v57 }
 0x2fc   : > { %v1091_v59 = vpop.f32.mrf.mxu0  ;;  %v1132_v47 = vpop.f32.mrf.mxu1 }
 0x2fd   : > { %v2178_v38 = vmul.f32 -1.442695, %v1137_v35  ;;  %v1138_v44 = vadd.f32 %v1091_v59, %v3653_v63  ;;  %v2180_v56 = vmul.f32 -1.442695, %v1139_v7  ;;  %v1140_v50 = vadd.f32 %v1132_v47, %v3655_v8 }
 0x2fe   : > { %v1093_v6 = vpop.f32.mrf.mxu0  ;;  %v1134_v51 = vpop.f32.mrf.mxu1 }
 0x2ff   : > { %2405 = vpow2.f32 %v2178_v38  ;;  %v2179_v15 = vmul.f32 -1.442695, %v1138_v44 }
 0x300   : > { %v1094_v62 = vpop.f32.mrf.mxu0  ;;  %v1135_v42 = vpop.f32.mrf.mxu1 }
 0x301   : > { %2407 = vpow2.f32 %v2179_v15 }
 0x302   : > { %2409 = vpow2.f32 %v2180_v56 }
 0x303   : > { %2411 = vtanh.f32 %v1140_v50 }
 0x30c   : > { %v2406_v53 = vpop.eup %2405 }
 0x30d   : > { %v1150_v48 = vadd.f32 1.0, %v2406_v53 }
 0x30e   : > { %v2408_v49 = vpop.eup %2407 }
 0x30f   : > { %2413 = vrcp.f32 %v1150_v48  ;;  %v1151_v26 = vadd.f32 1.0, %v2408_v49  ;;  %v2410_v36 = vpop.eup %2409  ;;  %v1302_v49 = vpop.permute.xlu1 %1301 }
 0x310   : > { %v2412_v60 = vpop.eup %2411  ;;  %v1152_v4 = vadd.f32 1.0, %v2410_v36  ;;  %vm1303_vm12 = vcmp.eq.s32.totalorder %v1302_v49, 1 }
 0x311   : > { %2415 = vrcp.f32 %v1151_v26 }
 0x312   : > { %2417 = vrcp.f32 %v1152_v4 }
 0x31c   : > { %v2414_v61 = vpop.eup %2413 }
 0x31d   : > { %v1161_v58 = vmul.f32 %v2414_v61, %v2412_v60 }
 0x31e   : > { %v2416_v2 = vpop.eup %2415 }
 0x31f   : > { %v1160_v54 = vmul.f32 %v2416_v2, %v3143_v45  ;;  %v2418_v59 = vpop.eup %2417 }
 0x321   : > { %v1162_v1 = vadd.f32 %v1161_v58, %v1160_v54  ;;  %v3260_v54 = vld [vmem:[%s3621_s2 + $0xe0] ss:$16 sps:$4 sm:$0xff]  }
 0x323   : > { %2419 = vtanh.f32 %v1162_v1  ;;  %v3191_v35 = vsel %vm1172_vm11, %v1162_v1, %v3143_v45  ;;  %v3659_v45 = vld [vmem:[#allocation12_spill] sm:$0xff]  ;;  %v3266_v1 = vld [vmem:[%s3621_s2 + $0xe8] ss:$16 sps:$4 sm:$0xff]  }
 0x330   : > { %v2420_v47 = vpop.eup %2419 }
 0x331   : > { %v1164_v38 = vmul.f32 %v2420_v47, %v2418_v59  ;;  %v3278_v59 = vld [vmem:[%s3621_s2 + $0xcc] ss:$16 sps:$4 sm:$0xff]   ;;  %v3286_v47 = vld [vmem:[%s3621_s2 + $0xc0] ss:$16 sps:$4 sm:$0xff]  }
 0x333   : > { %v3194_v63 = vsel %vm1172_vm11, %v1164_v38, %v3146_v0  ;;  %v1175_v44 = vsel %vm1172_vm11, %v1164_v38, 0.0  ;;  %v3292_v38 = vld [vmem:[%s3621_s2 + $0xc8] ss:$16 sps:$4 sm:$0xff]  }
 0x334   : > { %2181 = vst [vmem:[%s2704_s22 + $0x10] sm:$0xff] %v1175_v44  ;;  %v1185_v6 = vpack.c.bf16 %v3194_v63, %v3194_v63  ;;  %v3304_v44 = vld [vmem:[%s3621_s2 + $0xac] ss:$16 sps:$4 sm:$0xff]  }
 0x336   : > { %1219 = vmatmul.mubr.bf16.vlgmr.msra.gmra.mxu0 %v1185_v6  ;;  %1260 = vmatmul.mubr.bf16.vlgmr.msra.gmra.mxu1 %v1185_v6  ;;  %v3310_v6 = vld [vmem:[%s3621_s2 + $0xa0] ss:$16 sps:$4 sm:$0xff]  }
 0x337   : > { %1318 = vmatpush1.bf16.msra.mxu0 %v2737_v9  ;;  %1359 = vmatpush1.bf16.msra.mxu1 %v2743_v10  ;;  %v3234_v9 = vld [vmem:[%s3621_s2 + $0xe4] ss:$16 sps:$4 sm:$0xff]   ;;  %v3240_v10 = vld [vmem:[%s3621_s2 + $0xec] ss:$16 sps:$4 sm:$0xff]  }
 0x338   : > { %1319 = vmatprep.subr.bf16.mxu0 %v2750_v11  ;;  %1360 = vmatprep.subr.bf16.mxu1 %v2757_v12 }
 0x339   : > { %1349 = vmatprep.mubr.bf16.mxu0 %v3652_v3  ;;  %1390 = vmatprep.mubr.bf16.mxu1 %v3652_v3 }
 0x33b   : > { %1320 = vmatpush1.bf16.msra.mxu0 %v2762_v13  ;;  %1361 = vmatpush1.bf16.msra.mxu1 %v2767_v14  ;;  %v3656_v13 = vld [vmem:[#allocation9_spill] sm:$0xff] }
 0x33c   : > { %1321 = vmatprep.subr.bf16.mxu0 %v2777_v16  ;;  %1362 = vmatprep.subr.bf16.mxu1 %v2783_v17 }
 0x33f   : > { %1322 = vmatpush1.bf16.msra.mxu0 %v2789_v18  ;;  %1363 = vmatpush1.bf16.msra.mxu1 %v2794_v19  ;;  %v3657_v19 = vld [vmem:[#allocation11_spill] sm:$0xff] }
 0x340   : > { %1323 = vmatprep.subr.bf16.mxu0 %v2801_v20  ;;  %1364 = vmatprep.subr.bf16.mxu1 %v2807_v21 }
 0x343   : > { %1324 = vmatpush1.bf16.msra.mxu0 %v2814_v22  ;;  %1365 = vmatpush1.bf16.msra.mxu1 %v2820_v23 }
 0x344   : > { %1325 = vmatprep.subr.bf16.mxu0 %v2828_v24  ;;  %1366 = vmatprep.subr.bf16.mxu1 %v2835_v25 }
 0x347   : > { %1326 = vmatpush1.bf16.msra.mxu0 %v2842_v27  ;;  %1367 = vmatpush1.bf16.msra.mxu1 %v2849_v28  ;;  %v3658_v27 = vld [vmem:[#allocation10_spill] sm:$0xff] }
 0x348   : > { %1327 = vmatprep.subr.bf16.mxu0 %v2854_v29  ;;  %1368 = vmatprep.subr.bf16.mxu1 %v2860_v30 }
 0x34b   : > { %1328 = vmatpush1.bf16.msra.mxu0 %v2868_v31  ;;  %1369 = vmatpush1.bf16.msra.mxu1 %v2873_v32 }
 0x34c   : > { %1329 = vmatprep.subr.bf16.mxu0 %v2881_v33  ;;  %1370 = vmatprep.subr.bf16.mxu1 %v2888_v34 }
 0x34f   : > { %1330 = vmatpush1.bf16.msra.mxu0 %v2897_v37  ;;  %1371 = vmatpush1.bf16.msra.mxu1 %v2909_v39 }
 0x350   : > { %1331 = vmatprep.subr.bf16.mxu0 %v2914_v40  ;;  %1372 = vmatprep.subr.bf16.mxu1 %v2921_v41 }
 0x353   : > { %1332 = vmatpush1.bf16.msra.mxu0 %v2930_v43  ;;  %1373 = vmatpush1.bf16.msra.mxu1 %v2941_v46 }
 0x354   : > { %1448 = vmatprep.subr.bf16.mxu0 %v3234_v9  ;;  %1489 = vmatprep.subr.bf16.mxu1 %v3240_v10 }
 0x3f6   : > { %v1220_v11 = vpop.f32.mrf.mxu0  ;;  %v1261_v12 = vpop.f32.mrf.mxu1 }
 0x3f7   : > { %v1268_v14 = vadd.f32 %v1220_v11, %v3656_v13  ;;  %v1270_v28 = vadd.f32 %v1261_v12, %v3658_v27  ;;  %v3316_v11 = vld [vmem:[%s3621_s2 + $0xa8] ss:$16 sps:$4 sm:$0xff]   ;;  %v3322_v12 = vld [vmem:[%s3621_s2 + $0x84] ss:$16 sps:$4 sm:$0xff]   ;;  %v3328_v13 = vld [vmem:[%s3621_s2 + $0x8c] ss:$16 sps:$4 sm:$0xff]  }
 0x3f8   : > { %v1222_v16 = vpop.f32.mrf.mxu0  ;;  %v1263_v17 = vpop.f32.mrf.mxu1 }
 0x3f9   : > { %v2182_v18 = vmul.f32 -1.442695, %v1268_v14  ;;  %v1269_v20 = vadd.f32 %v1222_v16, %v3657_v19  ;;  %v2184_v29 = vmul.f32 -1.442695, %v1270_v28  ;;  %v1271_v0 = vadd.f32 %v1263_v17, %v3659_v45  ;;  %v3334_v14 = vld [vmem:[%s3621_s2 + $0x80] ss:$16 sps:$4 sm:$0xff]  }
 0x3fa   : > { %v1224_v21 = vpop.f32.mrf.mxu0  ;;  %v1265_v22 = vpop.f32.mrf.mxu1  ;;  %v3340_v16 = vld [vmem:[%s3621_s2 + $0x88] ss:$16 sps:$4 sm:$0xff]   ;;  %v3346_v17 = vld [vmem:[%s3621_s2 + $0x64] ss:$16 sps:$4 sm:$0xff]   ;;  %v3358_v19 = vld [vmem:[%s3621_s2 + $0x60] ss:$16 sps:$4 sm:$0xff]  }
 0x3fb   : > { %2421 = vpow2.f32 %v2182_v18  ;;  %v2183_v23 = vmul.f32 -1.442695, %v1269_v20  ;;  %v3352_v18 = vld [vmem:[%s3621_s2 + $0x6c] ss:$16 sps:$4 sm:$0xff]   ;;  %v3364_v20 = vld [vmem:[%s3621_s2 + $0x68] ss:$16 sps:$4 sm:$0xff]  }
 0x3fc   : > { %v1225_v24 = vpop.f32.mrf.mxu0  ;;  %v1266_v25 = vpop.f32.mrf.mxu1  ;;  %v3370_v21 = vld [vmem:[%s3621_s2 + $0x44] ss:$16 sps:$4 sm:$0xff]  }
 0x3fd   : > { %2423 = vpow2.f32 %v2183_v23 }
 0x3fe   : > { %2425 = vpow2.f32 %v2184_v29  ;;  %v3663_v29 = vld [vmem:[#allocation16_spill] sm:$0xff] }
 0x3ff   : > { %2427 = vtanh.f32 %v1271_v0 }
 0x408   : > { %v2422_v51 = vpop.eup %2421 }
 0x409   : > { %v1281_v15 = vadd.f32 1.0, %v2422_v51 }
 0x40a   : > { %v2424_v62 = vpop.eup %2423 }
 0x40b   : > { %2429 = vrcp.f32 %v1281_v15  ;;  %v1282_v42 = vadd.f32 1.0, %v2424_v62  ;;  %v2426_v57 = vpop.eup %2425 }
 0x40c   : > { %v2428_v7 = vpop.eup %2427  ;;  %v1283_v53 = vadd.f32 1.0, %v2426_v57 }
 0x40d   : > { %2431 = vrcp.f32 %v1282_v42 }
 0x40e   : > { %2433 = vrcp.f32 %v1283_v53 }
 0x418   : > { %v2430_v56 = vpop.eup %2429 }
 0x419   : > { %v1292_v8 = vmul.f32 %v2430_v56, %v2428_v7 }
 0x41a   : > { %v2432_v50 = vpop.eup %2431 }
 0x41b   : > { %v1291_v48 = vmul.f32 %v2432_v50, %v3191_v35  ;;  %v2434_v60 = vpop.eup %2433 }
 0x41d   : > { %v1293_v26 = vadd.f32 %v1292_v8, %v1291_v48  ;;  %v1433_v48 = vpop.permute.xlu0 %1432 }
 0x41e   : > { %vm1434_vm13 = vcmp.eq.s32.totalorder %v1433_v48, 1 }
 0x41f   : > { %2435 = vtanh.f32 %v1293_v26  ;;  %v3249_v36 = vsel %vm1303_vm12, %v1293_v26, %v3191_v35  ;;  %v3272_v35 = vld [vmem:[%s3621_s2 + $0xc4] ss:$16 sps:$4 sm:$0xff]  }
 0x42c   : > { %v2436_v61 = vpop.eup %2435 }
 0x42d   : > { %v1295_v5 = vmul.f32 %v2436_v61, %v2434_v60 }
 0x42f   : > { %v3252_v58 = vsel %vm1303_vm12, %v1295_v5, %v3194_v63  ;;  %v1306_v2 = vsel %vm1303_vm12, %v1295_v5, 0.0  ;;  %v3298_v63 = vld [vmem:[%s3621_s2 + $0xa4] ss:$16 sps:$4 sm:$0xff]  }
 0x430   : > { %2185 = vst [vmem:[%s2704_s22 + $0x18] sm:$0xff] %v1306_v2  ;;  %v1316_v4 = vpack.c.bf16 %v3252_v58, %v3252_v58 }
 0x432   : > { %1350 = vmatmul.mubr.bf16.vlgmr.msra.gmra.mxu0 %v1316_v4  ;;  %1391 = vmatmul.mubr.bf16.vlgmr.msra.gmra.mxu1 %v1316_v4 }
 0x433   : > { %1449 = vmatpush1.bf16.msra.mxu0 %v3260_v54  ;;  %1490 = vmatpush1.bf16.msra.mxu1 %v3266_v1 }
 0x434   : > { %1450 = vmatprep.subr.bf16.mxu0 %v3272_v35  ;;  %1491 = vmatprep.subr.bf16.mxu1 %v3278_v59 }
 0x435   : > { %1480 = vmatprep.mubr.bf16.mxu0 %v3652_v3  ;;  %1521 = vmatprep.mubr.bf16.mxu1 %v3652_v3 }
 0x437   : > { %1451 = vmatpush1.bf16.msra.mxu0 %v3286_v47  ;;  %1492 = vmatpush1.bf16.msra.mxu1 %v3292_v38 }
 0x438   : > { %1452 = vmatprep.subr.bf16.mxu0 %v3298_v63  ;;  %1493 = vmatprep.subr.bf16.mxu1 %v3304_v44 }
 0x43b   : > { %1453 = vmatpush1.bf16.msra.mxu0 %v3310_v6  ;;  %1494 = vmatpush1.bf16.msra.mxu1 %v3316_v11 }
 0x43c   : > { %1454 = vmatprep.subr.bf16.mxu0 %v3322_v12  ;;  %1495 = vmatprep.subr.bf16.mxu1 %v3328_v13 }
 0x43f   : > { %1455 = vmatpush1.bf16.msra.mxu0 %v3334_v14  ;;  %1496 = vmatpush1.bf16.msra.mxu1 %v3340_v16 }
 0x440   : > { %1456 = vmatprep.subr.bf16.mxu0 %v3346_v17  ;;  %1497 = vmatprep.subr.bf16.mxu1 %v3352_v18 }
 0x443   : > { %1457 = vmatpush1.bf16.msra.mxu0 %v3358_v19  ;;  %1498 = vmatpush1.bf16.msra.mxu1 %v3364_v20 }
 0x444   : > { %1458 = vmatprep.subr.bf16.mxu0 %v3370_v21  ;;  %1499 = vmatprep.subr.bf16.mxu1 %v2860_v30 }
 0x447   : > { %1459 = vmatpush1.bf16.msra.mxu0 %v2868_v31  ;;  %1500 = vmatpush1.bf16.msra.mxu1 %v2873_v32  ;;  %v3660_v32 = vld [vmem:[#allocation13_spill] sm:$0xff] }
 0x448   : > { %1460 = vmatprep.subr.bf16.mxu0 %v2881_v33  ;;  %1501 = vmatprep.subr.bf16.mxu1 %v2888_v34 }
 0x44b   : > { %1461 = vmatpush1.bf16.msra.mxu0 %v2897_v37  ;;  %1502 = vmatpush1.bf16.msra.mxu1 %v2909_v39  ;;  %v3661_v39 = vld [vmem:[#allocation15_spill] sm:$0xff] }
 0x44c   : > { %1462 = vmatprep.subr.bf16.mxu0 %v2914_v40  ;;  %1503 = vmatprep.subr.bf16.mxu1 %v2921_v41 }
 0x44f   : > { %1463 = vmatpush1.bf16.msra.mxu0 %v2930_v43  ;;  %1504 = vmatpush1.bf16.msra.mxu1 %v2941_v46  ;;  %v3662_v46 = vld [vmem:[#allocation14_spill] sm:$0xff] }
 0x450   : > { %1579 = vmatprep.subr.bf16.mxu0 %v3234_v9  ;;  %1620 = vmatprep.subr.bf16.mxu1 %v3240_v10 }
 0x4f2   : > { %v1351_v30 = vpop.f32.mrf.mxu0  ;;  %v1392_v31 = vpop.f32.mrf.mxu1 }
 0x4f3   : > { %v1399_v33 = vadd.f32 %v1351_v30, %v3660_v32  ;;  %v1401_v27 = vadd.f32 %v1392_v31, %v3662_v46  ;;  %v3436_v31 = vld [vmem:[%s3621_s2 + $0x48] ss:$16 sps:$4 sm:$0xff]   ;;  %v3442_v32 = vld [vmem:[%s3621_s2 + $0x24] ss:$16 sps:$4 sm:$0xff]  }
 0x4f4   : > { %v1353_v34 = vpop.f32.mrf.mxu0  ;;  %v1394_v37 = vpop.f32.mrf.mxu1 }
 0x4f5   : > { %v2186_v22 = vmul.f32 -1.442695, %v1399_v33  ;;  %v1400_v23 = vadd.f32 %v1353_v34, %v3661_v39  ;;  %v2188_v28 = vmul.f32 -1.442695, %v1401_v27  ;;  %v1402_v45 = vadd.f32 %v1394_v37, %v3663_v29  ;;  %v3448_v33 = vld [vmem:[%s3621_s2 + $0x2c] ss:$16 sps:$4 sm:$0xff]  }
 0x4f6   : > { %v1355_v40 = vpop.f32.mrf.mxu0  ;;  %v1396_v24 = vpop.f32.mrf.mxu1  ;;  %v3454_v34 = vld [vmem:[%s3621_s2 + $0x20] ss:$16 sps:$4 sm:$0xff]   ;;  %v3460_v37 = vld [vmem:[%s3621_s2 + $0x28] ss:$16 sps:$4 sm:$0xff]   ;;  %v3472_v39 = vld [vmem:[%s3621_s2 + $0xc] ss:$16 sps:$4 sm:$0xff]  }
 0x4f7   : > { %2437 = vpow2.f32 %v2186_v22  ;;  %v2187_v41 = vmul.f32 -1.442695, %v1400_v23  ;;  %v3466_v22 = vld [vmem:[%s3621_s2 + $0x4] ss:$16 sps:$4 sm:$0xff]   ;;  %v3478_v23 = vld [vmem:[%s3621_s2] ss:$16 sps:$4 sm:$0xff]  }
 0x4f8   : > { %v1356_v43 = vpop.f32.mrf.mxu0  ;;  %v1397_v25 = vpop.f32.mrf.mxu1  ;;  %v3484_v40 = vld [vmem:[%s3621_s2 + $0x8] ss:$16 sps:$4 sm:$0xff]  }
 0x4f9   : > { %2439 = vpow2.f32 %v2187_v41  ;;  %v3664_v43 = vld [vmem:[#allocation17_spill] sm:$0xff]  ;;  %v3665_v29 = vld [vmem:[#allocation19_spill] sm:$0xff] }
 0x4fa   : > { %2441 = vpow2.f32 %v2188_v28 }
 0x4fb   : > { %2443 = vtanh.f32 %v1402_v45 }
 0x504   : > { %v2438_v0 = vpop.eup %2437 }
 0x505   : > { %v1412_v51 = vadd.f32 1.0, %v2438_v0 }
 0x506   : > { %v2440_v15 = vpop.eup %2439 }
 0x507   : > { %2445 = vrcp.f32 %v1412_v51  ;;  %v1413_v62 = vadd.f32 1.0, %v2440_v15  ;;  %v2442_v42 = vpop.eup %2441 }
 0x508   : > { %v2444_v57 = vpop.eup %2443  ;;  %v1414_v50 = vadd.f32 1.0, %v2442_v42 }
 0x509   : > { %2447 = vrcp.f32 %v1413_v62 }
 0x50a   : > { %2449 = vrcp.f32 %v1414_v50 }
 0x514   : > { %v2446_v7 = vpop.eup %2445 }
 0x515   : > { %v1423_v56 = vmul.f32 %v2446_v7, %v2444_v57  ;;  %v3666_v57 = vld [vmem:[#allocation18_spill] sm:$0xff] }
 0x516   : > { %v2448_v8 = vpop.eup %2447 }
 0x517   : > { %v1422_v53 = vmul.f32 %v2448_v8, %v3249_v36  ;;  %v2450_v60 = vpop.eup %2449 }
 0x519   : > { %v1424_v49 = vadd.f32 %v1423_v56, %v1422_v53 }
 0x51b   : > { %2451 = vtanh.f32 %v1424_v49  ;;  %v3392_v26 = vsel %vm1434_vm13, %v1424_v49, %v3249_v36  ;;  %v3424_v36 = vld [vmem:[%s3621_s2 + $0x4c] ss:$16 sps:$4 sm:$0xff]  }
 0x528   : > { %v2452_v61 = vpop.eup %2451 }
 0x529   : > { %v1426_v5 = vmul.f32 %v2452_v61, %v2450_v60 }
 0x52b   : > { %v3395_v2 = vsel %vm1434_vm13, %v1426_v5, %v3252_v58  ;;  %v1437_v4 = vsel %vm1434_vm13, %v1426_v5, 0.0  ;;  %v3430_v58 = vld [vmem:[%s3621_s2 + $0x40] ss:$16 sps:$4 sm:$0xff]  }
 0x52c   : > { %2189 = vst [vmem:[%s2704_s22 + $0x20] sm:$0xff] %v1437_v4  ;;  %v1447_v30 = vpack.c.bf16 %v3395_v2, %v3395_v2 }
 0x52e   : > { %1481 = vmatmul.mubr.bf16.vlgmr.msra.gmra.mxu0 %v1447_v30  ;;  %1522 = vmatmul.mubr.bf16.vlgmr.msra.gmra.mxu1 %v1447_v30 }
 0x52f   : > { %1580 = vmatpush1.bf16.msra.mxu0 %v3260_v54  ;;  %1621 = vmatpush1.bf16.msra.mxu1 %v3266_v1 }
 0x530   : > { %1581 = vmatprep.subr.bf16.mxu0 %v3272_v35  ;;  %1622 = vmatprep.subr.bf16.mxu1 %v3278_v59 }
 0x531   : > { %1611 = vmatprep.mubr.bf16.mxu0 %v3652_v3  ;;  %1652 = vmatprep.mubr.bf16.mxu1 %v3652_v3 }
 0x533   : > { %1582 = vmatpush1.bf16.msra.mxu0 %v3286_v47  ;;  %1623 = vmatpush1.bf16.msra.mxu1 %v3292_v38 }
 0x534   : > { %1583 = vmatprep.subr.bf16.mxu0 %v3298_v63  ;;  %1624 = vmatprep.subr.bf16.mxu1 %v3304_v44 }
 0x537   : > { %1584 = vmatpush1.bf16.msra.mxu0 %v3310_v6  ;;  %1625 = vmatpush1.bf16.msra.mxu1 %v3316_v11 }
 0x538   : > { %1585 = vmatprep.subr.bf16.mxu0 %v3322_v12  ;;  %1626 = vmatprep.subr.bf16.mxu1 %v3328_v13 }
 0x53b   : > { %1586 = vmatpush1.bf16.msra.mxu0 %v3334_v14  ;;  %1627 = vmatpush1.bf16.msra.mxu1 %v3340_v16 }
 0x53c   : > { %1587 = vmatprep.subr.bf16.mxu0 %v3346_v17  ;;  %1628 = vmatprep.subr.bf16.mxu1 %v3352_v18 }
 0x53f   : > { %1588 = vmatpush1.bf16.msra.mxu0 %v3358_v19  ;;  %1629 = vmatpush1.bf16.msra.mxu1 %v3364_v20 }
 0x540   : > { %1589 = vmatprep.subr.bf16.mxu0 %v3370_v21  ;;  %1630 = vmatprep.subr.bf16.mxu1 %v3424_v36 }
 0x543   : > { %1590 = vmatpush1.bf16.msra.mxu0 %v3430_v58  ;;  %1631 = vmatpush1.bf16.msra.mxu1 %v3436_v31 }
 0x544   : > { %1591 = vmatprep.subr.bf16.mxu0 %v3442_v32  ;;  %1632 = vmatprep.subr.bf16.mxu1 %v3448_v33 }
 0x547   : > { %1592 = vmatpush1.bf16.msra.mxu0 %v3454_v34  ;;  %1633 = vmatpush1.bf16.msra.mxu1 %v3460_v37 }
 0x548   : > { %1593 = vmatprep.subr.bf16.mxu0 %v3466_v22  ;;  %1634 = vmatprep.subr.bf16.mxu1 %v3472_v39 }
 0x54b   : > { %1594 = vmatpush1.bf16.msra.mxu0 %v3478_v23  ;;  %1635 = vmatpush1.bf16.msra.mxu1 %v3484_v40 }
 0x54c   : > { %1710 = vmatprep.subr.bf16.mxu0 %v3234_v9  ;;  %1751 = vmatprep.subr.bf16.mxu1 %v3240_v10  ;;  %v3667_v10 = vld [vmem:[#allocation20_spill] sm:$0xff] }
 0x5ee   : > { %v1482_v24 = vpop.f32.mrf.mxu0  ;;  %v1523_v41 = vpop.f32.mrf.mxu1 }
 0x5ef   : > { %v1530_v25 = vadd.f32 %v1482_v24, %v3664_v43  ;;  %v1532_v9 = vadd.f32 %v1523_v41, %v3666_v57  ;;  %v1564_v41 = vpop.permute.xlu1 %1563 }
 0x5f0   : > { %v1484_v46 = vpop.f32.mrf.mxu0  ;;  %v1525_v27 = vpop.f32.mrf.mxu1  ;;  %vm1565_vm14 = vcmp.eq.s32.totalorder %v1564_v41, 1 }
 0x5f1   : > { %v2190_v28 = vmul.f32 -1.442695, %v1530_v25  ;;  %v1531_v45 = vadd.f32 %v1484_v46, %v3665_v29  ;;  %v2192_v7 = vmul.f32 -1.442695, %v1532_v9  ;;  %v1533_v56 = vadd.f32 %v1525_v27, %v3667_v10 }
 0x5f2   : > { %v1486_v0 = vpop.f32.mrf.mxu0  ;;  %v1527_v51 = vpop.f32.mrf.mxu1 }
 0x5f3   : > { %2453 = vpow2.f32 %v2190_v28  ;;  %v2191_v15 = vmul.f32 -1.442695, %v1531_v45 }
 0x5f4   : > { %v1487_v62 = vpop.f32.mrf.mxu0  ;;  %v1528_v42 = vpop.f32.mrf.mxu1 }
 0x5f5   : > { %2455 = vpow2.f32 %v2191_v15 }
 0x5f6   : > { %2457 = vpow2.f32 %v2192_v7 }
 0x5f7   : > { %2459 = vtanh.f32 %v1533_v56  ;;  %v3672_v56 = vld [vmem:[#allocation25_spill] sm:$0xff] }
 0x600   : > { %v2454_v8 = vpop.eup %2453 }
 0x601   : > { %v1543_v50 = vadd.f32 1.0, %v2454_v8 }
 0x602   : > { %v2456_v53 = vpop.eup %2455 }
 0x603   : > { %2461 = vrcp.f32 %v1543_v50  ;;  %v1544_v48 = vadd.f32 1.0, %v2456_v53  ;;  %v2458_v49 = vpop.eup %2457 }
 0x604   : > { %v2460_v60 = vpop.eup %2459  ;;  %v1545_v30 = vadd.f32 1.0, %v2458_v49 }
 0x605   : > { %2463 = vrcp.f32 %v1544_v48 }
 0x606   : > { %2465 = vrcp.f32 %v1545_v30 }
 0x610   : > { %v2462_v61 = vpop.eup %2461 }
 0x611   : > { %v1554_v5 = vmul.f32 %v2462_v61, %v2460_v60 }
 0x612   : > { %v2464_v4 = vpop.eup %2463 }
 0x613   : > { %v1553_v24 = vmul.f32 %v2464_v4, %v3392_v26  ;;  %v2466_v46 = vpop.eup %2465 }
 0x615   : > { %v1555_v43 = vadd.f32 %v1554_v5, %v1553_v24  ;;  %v3673_v24 = vld [vmem:[#allocation26_spill] sm:$0xff] }
 0x617   : > { %2467 = vtanh.f32 %v1555_v43  ;;  %v3495_v25 = vsel %vm1565_vm14, %v1555_v43, %v3392_v26 }
 0x624   : > { %v2468_v27 = vpop.eup %2467 }
 0x625   : > { %v1557_v28 = vmul.f32 %v2468_v27, %v2466_v46 }
 0x627   : > { %v3498_v29 = vsel %vm1565_vm14, %v1557_v28, %v3395_v2  ;;  %v1568_v45 = vsel %vm1565_vm14, %v1557_v28, 0.0 }
 0x628   : > { %2193 = vst [vmem:[%s2704_s22 + $0x28] sm:$0xff] %v1568_v45  ;;  %v1578_v0 = vpack.c.bf16 %v3498_v29, %v3498_v29 }
 0x62a   : > { %1612 = vmatmul.mubr.bf16.vlgmr.msra.gmra.mxu0 %v1578_v0  ;;  %1653 = vmatmul.mubr.bf16.vlgmr.msra.gmra.mxu1 %v1578_v0 }
 0x62b   : > { %1711 = vmatpush1.bf16.msra.mxu0 %v3260_v54  ;;  %1752 = vmatpush1.bf16.msra.mxu1 %v3266_v1  ;;  %v3668_v1 = vld [vmem:[#allocation21_spill] sm:$0xff] }
 0x62c   : > { %1712 = vmatprep.subr.bf16.mxu0 %v3272_v35  ;;  %1753 = vmatprep.subr.bf16.mxu1 %v3278_v59 }
 0x62d   : > { %1742 = vmatprep.mubr.bf16.mxu0 %v3652_v3  ;;  %1783 = vmatprep.mubr.bf16.mxu1 %v3652_v3 }
 0x62f   : > { %1713 = vmatpush1.bf16.msra.mxu0 %v3286_v47  ;;  %1754 = vmatpush1.bf16.msra.mxu1 %v3292_v38 }
 0x630   : > { %1714 = vmatprep.subr.bf16.mxu0 %v3298_v63  ;;  %1755 = vmatprep.subr.bf16.mxu1 %v3304_v44  ;;  %v3669_v63 = vld [vmem:[#allocation23_spill] sm:$0xff] }
 0x633   : > { %1715 = vmatpush1.bf16.msra.mxu0 %v3310_v6  ;;  %1756 = vmatpush1.bf16.msra.mxu1 %v3316_v11 }
 0x634   : > { %1716 = vmatprep.subr.bf16.mxu0 %v3322_v12  ;;  %1757 = vmatprep.subr.bf16.mxu1 %v3328_v13 }
 0x637   : > { %1717 = vmatpush1.bf16.msra.mxu0 %v3334_v14  ;;  %1758 = vmatpush1.bf16.msra.mxu1 %v3340_v16  ;;  %v3670_v16 = vld [vmem:[#allocation22_spill] sm:$0xff] }
 0x638   : > { %1718 = vmatprep.subr.bf16.mxu0 %v3346_v17  ;;  %1759 = vmatprep.subr.bf16.mxu1 %v3352_v18 }
 0x63b   : > { %1719 = vmatpush1.bf16.msra.mxu0 %v3358_v19  ;;  %1760 = vmatpush1.bf16.msra.mxu1 %v3364_v20  ;;  %v3671_v19 = vld [vmem:[#allocation24_spill] sm:$0xff] }
 0x63c   : > { %1720 = vmatprep.subr.bf16.mxu0 %v3370_v21  ;;  %1761 = vmatprep.subr.bf16.mxu1 %v3424_v36 }
 0x63f   : > { %1721 = vmatpush1.bf16.msra.mxu0 %v3430_v58  ;;  %1762 = vmatpush1.bf16.msra.mxu1 %v3436_v31 }
 0x640   : > { %1722 = vmatprep.subr.bf16.mxu0 %v3442_v32  ;;  %1763 = vmatprep.subr.bf16.mxu1 %v3448_v33 }
 0x643   : > { %1723 = vmatpush1.bf16.msra.mxu0 %v3454_v34  ;;  %1764 = vmatpush1.bf16.msra.mxu1 %v3460_v37 }
 0x644   : > { %1724 = vmatprep.subr.bf16.mxu0 %v3466_v22  ;;  %1765 = vmatprep.subr.bf16.mxu1 %v3472_v39  ;;  %v1695_v22 = vpop.permute.xlu0 %1694 }
 0x645   : > { %vm1696_vm15 = vcmp.eq.s32.totalorder %v1695_v22, 1 }
 0x647   : > { %1725 = vmatpush1.bf16.msra.mxu0 %v3478_v23  ;;  %1766 = vmatpush1.bf16.msra.mxu1 %v3484_v40 }
 0x6ea   : > { %v1613_v3 = vpop.f32.mrf.mxu0  ;;  %v1654_v54 = vpop.f32.mrf.mxu1 }
 0x6eb   : > { %v1661_v35 = vadd.f32 %v1613_v3, %v3668_v1  ;;  %v1663_v17 = vadd.f32 %v1654_v54, %v3670_v16 }
 0x6ec   : > { %v1615_v59 = vpop.f32.mrf.mxu0  ;;  %v1656_v47 = vpop.f32.mrf.mxu1 }
 0x6ed   : > { %v2194_v38 = vmul.f32 -1.442695, %v1661_v35  ;;  %v1662_v44 = vadd.f32 %v1615_v59, %v3669_v63  ;;  %v2196_v18 = vmul.f32 -1.442695, %v1663_v17  ;;  %v1664_v20 = vadd.f32 %v1656_v47, %v3671_v19  ;;  %v1826_v35 = vpop.permute.xlu1 %1825 }
 0x6ee   : > { %v1617_v6 = vpop.f32.mrf.mxu0  ;;  %v1658_v11 = vpop.f32.mrf.mxu1  ;;  %vm1827_vm0 = vcmp.eq.s32.totalorder %v1826_v35, 1 }
 0x6ef   : > { %2469 = vpow2.f32 %v2194_v38  ;;  %v2195_v12 = vmul.f32 -1.442695, %v1662_v44 }
 0x6f0   : > { %v1618_v13 = vpop.f32.mrf.mxu0  ;;  %v1659_v14 = vpop.f32.mrf.mxu1 }
 0x6f1   : > { %2471 = vpow2.f32 %v2195_v12 }
 0x6f2   : > { %2473 = vpow2.f32 %v2196_v18 }
 0x6f3   : > { %2475 = vtanh.f32 %v1664_v20 }
 0x6fc   : > { %v2470_v21 = vpop.eup %2469 }
 0x6fd   : > { %v1674_v26 = vadd.f32 1.0, %v2470_v21 }
 0x6fe   : > { %v2472_v2 = vpop.eup %2471 }
 0x6ff   : > { %2477 = vrcp.f32 %v1674_v26  ;;  %v1675_v36 = vadd.f32 1.0, %v2472_v2  ;;  %v2474_v58 = vpop.eup %2473 }
 0x700   : > { %v2476_v31 = vpop.eup %2475  ;;  %v1676_v37 = vadd.f32 1.0, %v2474_v58 }
 0x701   : > { %2479 = vrcp.f32 %v1675_v36 }
 0x702   : > { %2481 = vrcp.f32 %v1676_v37 }
 0x70c   : > { %v2478_v32 = vpop.eup %2477 }
 0x70d   : > { %v1685_v33 = vmul.f32 %v2478_v32, %v2476_v31 }
 0x70e   : > { %v2480_v34 = vpop.eup %2479 }
 0x70f   : > { %v1684_v39 = vmul.f32 %v2480_v34, %v3495_v25  ;;  %v2482_v51 = vpop.eup %2481 }
 0x711   : > { %v1686_v23 = vadd.f32 %v1685_v33, %v1684_v39 }
 0x713   : > { %2483 = vtanh.f32 %v1686_v23  ;;  %v1698_v40 = vsel %vm1696_vm15, %v1686_v23, %v3495_v25 }
 0x720   : > { %v2484_v15 = vpop.eup %2483 }
 0x721   : > { %v1688_v62 = vmul.f32 %v2484_v15, %v2482_v51 }
 0x723   : > { %v1697_v42 = vsel %vm1696_vm15, %v1688_v62, %v3498_v29  ;;  %v1699_v57 = vsel %vm1696_vm15, %v1688_v62, 0.0 }
 0x724   : > { %2197 = vst [vmem:[%s2704_s22 + $0x30] sm:$0xff] %v1699_v57  ;;  %v1709_v9 = vpack.c.bf16 %v1697_v42, %v1697_v42 }
 0x726   : > { %1743 = vmatmul.mubr.bf16.vlgmr.msra.gmra.mxu0 %v1709_v9  ;;  %1784 = vmatmul.mubr.bf16.vlgmr.msra.gmra.mxu1 %v1709_v9 }
 0x7e6   : > { %v1744_v7 = vpop.f32.mrf.mxu0  ;;  %v1785_v10 = vpop.f32.mrf.mxu1 }
 0x7e7   : > { %v1792_v8 = vadd.f32 %v1744_v7, %v3672_v56  ;;  %v1794_v41 = vadd.f32 %v1785_v10, %v3673_v24 }
 0x7e8   : > { %v1746_v50 = vpop.f32.mrf.mxu0  ;;  %v1787_v53 = vpop.f32.mrf.mxu1 }
 0x7e9   : > { %v2198_v48 = vmul.f32 -1.442695, %v1792_v8  ;;  %v1793_v49 = vadd.f32 %v1746_v50, %v3073_v52  ;;  %v2200_v43 = vmul.f32 -1.442695, %v1794_v41  ;;  %v1795_v25 = vadd.f32 %v1787_v53, %v3076_v55 }
 0x7ea   : > { %v1748_v60 = vpop.f32.mrf.mxu0  ;;  %v1789_v61 = vpop.f32.mrf.mxu1 }
 0x7eb   : > { %2485 = vpow2.f32 %v2198_v48  ;;  %v2199_v5 = vmul.f32 -1.442695, %v1793_v49 }
 0x7ec   : > { %v1749_v4 = vpop.f32.mrf.mxu0  ;;  %v1790_v30 = vpop.f32.mrf.mxu1 }
 0x7ed   : > { %2487 = vpow2.f32 %v2199_v5 }
 0x7ee   : > { %2489 = vpow2.f32 %v2200_v43 }
 0x7ef   : > { %2491 = vtanh.f32 %v1795_v25 }
 0x7f8   : > { %v2486_v46 = vpop.eup %2485 }
 0x7f9   : > { %v1805_v27 = vadd.f32 1.0, %v2486_v46 }
 0x7fa   : > { %v2488_v28 = vpop.eup %2487 }
 0x7fb   : > { %2493 = vrcp.f32 %v1805_v27  ;;  %v1806_v29 = vadd.f32 1.0, %v2488_v28  ;;  %v2490_v52 = vpop.eup %2489 }
 0x7fc   : > { %v2492_v45 = vpop.eup %2491  ;;  %v1807_v1 = vadd.f32 1.0, %v2490_v52 }
 0x7fd   : > { %2495 = vrcp.f32 %v1806_v29 }
 0x7fe   : > { %2497 = vrcp.f32 %v1807_v1 }
 0x808   : > { %v2494_v0 = vpop.eup %2493 }
 0x809   : > { %v1816_v3 = vmul.f32 %v2494_v0, %v2492_v45 }
 0x80a   : > { %v2496_v54 = vpop.eup %2495 }
 0x80b   : > { %v1815_v59 = vmul.f32 %v2496_v54, %v1698_v40  ;;  %v2498_v38 = vpop.eup %2497 }
 0x80d   : > { %v1817_v47 = vadd.f32 %v1816_v3, %v1815_v59 }
 0x80f   : > { %2499 = vtanh.f32 %v1817_v47  ;;  %v1829_v55 = vsel %vm1827_vm0, %v1817_v47, %v1698_v40 }
 0x810   : > { %1834 = vst [vmem:[#allocation3] sm:$0xff] %v1829_v55 }
 0x81c   : > { %v2500_v63 = vpop.eup %2499  ;;  %1838 = sbr.rel (%p2202_p9) target bundleno = 2089 (0x829), region = 48 }
 0x81d   : > { %v1819_v44 = vmul.f32 %v2500_v63, %v2498_v38 }
 0x81f   : > { %v1828_v6 = vsel %vm1827_vm0, %v1819_v44, %v1697_v42  ;;  %v1830_v11 = vsel %vm1827_vm0, %v1819_v44, 0.0 }
 0x820   : > { %2201 = vst [vmem:[%s2704_s22 + $0x38] sm:$0xff] %v1830_v11  ;;  %1833 = vst [vmem:[#allocation2] sm:$0xff] %v1828_v6 }
 0x821   : > { %v1843_v13 = vld [vmem:[#allocation3] sm:$0xff] }
 0x822   : > { %1844 = vst [vmem:[%s3627_s8] sm:$0xff] %v1843_v13 }
 0x827   : > { %v1839_v12 = vld [vmem:[#allocation2] sm:$0xff] }
 0x828   : > { %1840 = vst [vmem:[%s3625_s6] sm:$0xff] %v1839_v12  ;;  %1842 = vst [vmem:[%s3626_s7] sm:$0xff] %v1839_v12 }
 0x829 PF: > { %1851 = sbr.rel (!%p2690_p4) target bundleno = 2133 (0x855), region = 52  ;;  %s1853_s11 = ssub.s32 (%p2690_p4), 20, %s2695_s15 }
 0x82a   : > { %s2220_s14 = sshll.u32 (%p2690_p4), %s2679_s30, 6  ;;  %p1854_p10 = scmp.lt.s32.totalorder (%p2690_p4), %s1853_s11, 8 }
 0x82b   : > { %s3565_s21 = scalar_lea.vmem (%p2690_p4), %s3624_s5, %s2220_s14  }
 0x82e   : > { %s3681_s11 = smov (!%p1854_p10, %s1853_s11), 8 }
 0x82f   : > { %s2205_s18 = sshll.u32 %s3681_s11, 7 }
 0x830   : > { %p2208_p11 = scmp.eq.s32.totalorder %s2205_s18, 0 }
 0x831   : > { %s3571_s19 = sshrl.u32 (!%p2208_p11), %s3681_s11, 3 }
 0x832   : > { %1862 = sbr.rel (%p2208_p11) target bundleno = 2133 (0x855), region = 56  ;;  %p2209_p12 = scmp.le.s32.totalorder (!%p2208_p11), %s3571_s19, 0 }
 0x837   : > { %2070 = sbr.rel (%p2209_p12) target bundleno = 2116 (0x844), region = 171  ;;  %s3674_s30 = smov (!%p2209_p12), %s3565_s21 }
 0x838   : > { %s3675_s13 = smov (!%p2209_p12), %s2704_s22  ;;  %s3580_s15 = smov (!%p2209_p12), 0  }
 0x839   : > { %s3582_s20 = smov (!%p2209_p12), 0  }
 0x83c LB: >> { %v1939_v14 = vld [vmem:[%s2595_s13] sm:$0xff]  ;;  %v1941_v16 = vld [vmem:[%s2595_s13 + $0x8] sm:$0xff]  ;;  %v1943_v17 = vld [vmem:[%s2595_s13 + $0x10] sm:$0xff]  ;;  %s1955_s23 = sadd.s32 1, %s2599_s15  ;;  %s1933_s20 = sadd.s32 1, %s2603_s20   ;;  %s2603_s20 = sphi %s3582_s20, %s1933_s20   ;;  %s2599_s15 = sphi %s3580_s15, %s3676_s15   ;;  %s2595_s13 = sphi %s3675_s13, %s1960_s13   ;;  %s2591_s30 = sphi %s3674_s30, %s1961_s30  }
 0x83d   : >> { %1940 = vst [vmem:[%s2591_s30] sm:$0xff] %v1939_v14  ;;  %1942 = vst [vmem:[%s2591_s30 + $0x8] sm:$0xff] %v1941_v16  ;;  %v1945_v18 = vld [vmem:[%s2595_s13 + $0x18] sm:$0xff]  ;;  %v1947_v19 = vld [vmem:[%s2595_s13 + $0x20] sm:$0xff]  ;;  %p1956_p13 = scmp.ge.s32.totalorder %s1955_s23, %s3571_s19  ;;  %p1932_p0 = scmp.ge.s32.totalorder %s1933_s20, %s3571_s19 }
 0x83e   : >> { %1944 = vst [vmem:[%s2591_s30 + $0x10] sm:$0xff] %v1943_v17  ;;  %v1949_v20 = vld [vmem:[%s2595_s13 + $0x28] sm:$0xff]  ;;  %1946 = vst [vmem:[%s2591_s30 + $0x18] sm:$0xff] %v1945_v18  ;;  %v1951_v21 = vld [vmem:[%s2595_s13 + $0x30] sm:$0xff] }
 0x83f   : >> { %1948 = vst [vmem:[%s2591_s30 + $0x20] sm:$0xff] %v1947_v19  ;;  %1950 = vst [vmem:[%s2591_s30 + $0x28] sm:$0xff] %v1949_v20  ;;  %v1953_v26 = vld [vmem:[%s2595_s13 + $0x38] sm:$0xff]  ;;  %s3683_s23 = smov (%p1956_p13, %s1955_s23), 0  ;;  %1935 = sbr.rel (!%p1932_p0) target bundleno = 2108 (0x83c), region = 177 }
 0x840   : >> { %1952 = vst [vmem:[%s2591_s30 + $0x30] sm:$0xff] %v1951_v21  ;;  %1954 = vst [vmem:[%s2591_s30 + $0x38] sm:$0xff] %v1953_v26  ;;  %s2210_s24 = sshll.u32 %s3683_s23, 6  ;;  %s3676_s15 = smov %s3683_s23 }
 0x841   : >> { %s1960_s13 = scalar_lea.vmem %s2704_s22, %s2210_s24 [#allocation5]   ;;  %s1961_s30 = scalar_lea.vmem %s3565_s21, %s2210_s24  }
 0x844 PF: > { %s3601_s25 = sand.u32 7, %s3681_s11   ;;  %s2221_s26 = sshll.u32 %s3571_s19, 6 }
 0x845   : > { %s1966_s27 = scalar_lea.vmem %s2704_s22, %s2221_s26 [#allocation5]   ;;  %s1968_s29 = scalar_lea.vmem %s3565_s21, %s2221_s26  }
 0x846   : > { %p2215_p1 = scmp.le.s32.totalorder %s3601_s25, 0 }
 0x847   : > { %s2605_s10 = smov (!%p2215_p1), %s1968_s29   ;;  %s2609_s14 = smov (!%p2215_p1), %s1966_s27  }
 0x848   : > { %2084 = sbr.rel (%p2215_p1) target bundleno = 2133 (0x855), region = 182  ;;  %s2613_s16 = smov (!%p2215_p1), 0  }
 0x849   : > { %s2617_s17 = smov (!%p2215_p1), 0  }
 0x84d LB: >> { %v1978_v2 = vld [vmem:[%s2611_s14] sm:$0xff]  ;;  %s1980_s11 = sadd.s32 1, %s2615_s16  ;;  %s1972_s17 = sadd.s32 1, %s2619_s17   ;;  %s2619_s17 = sphi %s2617_s17, %s1972_s17   ;;  %s2615_s16 = sphi %s2613_s16, %s2614_s16   ;;  %s2611_s14 = sphi %s2609_s14, %s1985_s14   ;;  %s2607_s10 = sphi %s2605_s10, %s1986_s10  }
 0x84e   : >> { %1979 = vst [vmem:[%s2607_s10] sm:$0xff] %v1978_v2  ;;  %p1981_p2 = scmp.ge.s32.totalorder %s1980_s11, %s3601_s25  ;;  %p1971_p3 = scmp.ge.s32.totalorder %s1972_s17, %s3601_s25 }
 0x850   : >> { %s3685_s11 = smov (%p1981_p2, %s1980_s11), 0  ;;  %1974 = sbr.rel (!%p1971_p3) target bundleno = 2125 (0x84d), region = 188 }
 0x851   : >> { %s2216_s22 = sshll.u32 %s3685_s11, 3  ;;  %s2614_s16 = smov %s3685_s11  }
 0x852   : >> { %s1985_s14 = scalar_lea.vmem %s1966_s27, %s2216_s22 [#allocation5]   ;;  %s1986_s10 = scalar_lea.vmem %s1968_s29, %s2216_s22  }
 0x855 PF: > { %p16_p4 = scmp.ge.s32.totalorder %s2681_s9, 5   ;;  %s3677_s27 = smov %s2583_s28 }
 0x856   : > { %s3678_s28 = smov %s2688_s12  ;;  %s3679_s29 = smov %s2681_s9 }
 0x857   :  { %18 = sbr.rel (!%p16_p4) target bundleno = 2 (0x2), region = 199 }

</bundles_post_ra>
